<compile_context>
chip_gen: v6e
topology: v6e:2x2x1
jax: 0.10.0
libtpu: 0.0.40
codegen_flags: <defaults>
</compile_context>

<pallas_src>
import functools

import jax
import jax.numpy as jnp
from jax import lax
from jax.experimental import pallas as pl
from jax.experimental.pallas import tpu as pltpu

EPS = 1e-5


def _round_up(v, m):
    return ((v + m - 1) // m) * m


def _vmem_budget():
    """Returns (vmem_limit_bytes, per-input-tile target bytes), generation-aware."""
    cap = None
    try:
        info = pltpu.get_tpu_info()
        cap = getattr(info, "vmem_capacity_bytes", None)
    except Exception:
        cap = None
    if cap is not None and cap >= 96 * 1024 * 1024:
        # v5e / v6e: 128 MiB physical VMEM -> big tiles, big scoped limit.
        return 88 * 1024 * 1024, 8 * 1024 * 1024
    # v7x (64 MiB physical) or unknown: conservative budget, safe everywhere.
    return 44 * 1024 * 1024, 4 * 1024 * 1024


def _pick_fold(n, h):
    """Fold k consecutive rows into the lane dim when H is lane-sparse (<128).

    Largest divisor k of n with k*h <= 1024 lanes, preferring k*h % 128 == 0
    (unmasked vst path)."""
    if h >= 128:
        return 1
    max_k = max(1, 1024 // h)
    best, best_dense = 1, 1
    for k in range(1, max_k + 1):
        if n % k == 0:
            best = k
            if (k * h) % 128 == 0:
                best_dense = k
    return best_dense if best_dense > 1 else best


def _pick_tiling(n2, h2, itemsize, target_bytes):
    """Row-tile / inner-slab sizes for the streamed passes."""
    pack = max(8, 32 // itemsize)          # sublane pack: 8 f32, 16 bf16, 32 i8/fp8
    row_bytes = h2 * itemsize
    # Inner slab: ~512 KiB of f32 work per unrolled step, multiple of the pack.
    slab = max(pack, ((512 * 1024) // max(h2 * 4, 1)) // pack * pack)
    # Tile = n_slabs slabs, sized to ~target_bytes of HBM-side input.
    n_slabs = max(1, target_bytes // max(slab * row_bytes, 1))
    n_slabs = int(min(n_slabs, 16))        # bound the unrolled inner loop
    tile_n = slab * n_slabs
    max_tile = _round_up(n2, slab)         # don't exceed the (rounded) problem
    if tile_n > max_tile:
        tile_n = max_tile
        n_slabs = tile_n // slab
    return tile_n, slab, n_slabs


def _stats_kernel(x_ref, sum_ref, sq_ref, *, n2, tile_n, n_half, slab, n_slabs):
    c = pl.program_id(0)      # TensorCore split (parallel axis)
    i = pl.program_id(1)      # row-tile index within this core's half (arbitrary)

    @pl.when(i == 0)
    def _init():
        sum_ref[...] = jnp.zeros_like(sum_ref)
        sq_ref[...] = jnp.zeros_like(sq_ref)

    h2 = x_ref.shape[1]
    # Valid rows in this tile (<=0 for the duplicate/clamped tile of an odd
    # split, < tile_n on the ragged tail).
    rem = n2 - (c * n_half + i) * tile_n
    row_id = lax.broadcasted_iota(jnp.int32, (slab, 1), 0)   # hoisted

    def body(j, carry):
        start = pl.multiple_of(j * slab, slab)
        xs = x_ref[pl.ds(start, slab), :].astype(jnp.float32)   # (slab, H2)
        xs = jnp.where(start + row_id < rem, xs, 0.0)            # mask OOB rows
        xr = xs.reshape(slab // 8, 8, h2)
        # Sublane-aligned partials: VPU adds only; cross-sublane collapse is
        # done once, in the tiny JAX combine between the two passes.
        sum_ref[...] += jnp.sum(xr, axis=0)                      # (8, H2)
        sq_ref[...] += jnp.sum(xr * xr, axis=0)                  # (8, H2)
        return carry

    lax.fori_loop(0, n_slabs, body, 0, unroll=True)


def _normalize_kernel(x_ref, scale_ref, shift_ref, o_ref):
    # y = x * scale + shift  — one mul + one add per element, HBM-bound.
    y = x_ref[...].astype(jnp.float32) * scale_ref[...] + shift_ref[...]
    o_ref[...] = y.astype(o_ref.dtype)


def batchnorm(x, gamma, beta, *, eps=EPS):
    """x: (B, T, H); gamma/beta: (H,). Returns (B, T, H)."""
    B, T, H = x.shape
    N = B * T

    # Fold rows into lanes when H is lane-sparse (free row-major reshape).
    k = _pick_fold(N, H)
    n2, h2 = N // k, k * H
    x2 = x.reshape(n2, h2)

    vmem_limit, tile_target = _vmem_budget()
    itemsize = jnp.dtype(x.dtype).itemsize
    tile_n, slab, n_slabs = _pick_tiling(n2, h2, itemsize, tile_target)

    n_tiles = pl.cdiv(n2, tile_n)
    n_half = pl.cdiv(n_tiles, 2)      # per-TensorCore tile count (v7x megacore)

    # --- pass 1: per-channel sum / sum-of-squares (split across 2 TCs) ------
    sums, sqs = pl.pallas_call(
        functools.partial(_stats_kernel, n2=n2, tile_n=tile_n, n_half=n_half,
                          slab=slab, n_slabs=n_slabs),
        out_shape=(jax.ShapeDtypeStruct((16, h2), jnp.float32),
                   jax.ShapeDtypeStruct((16, h2), jnp.float32)),
        grid=(2, n_half),
        in_specs=[pl.BlockSpec(
            (tile_n, h2),
            lambda c, i: (jnp.minimum(c * n_half + i, n_tiles - 1), 0))],
        out_specs=(pl.BlockSpec((8, h2), lambda c, i: (c, 0)),
                   pl.BlockSpec((8, h2), lambda c, i: (c, 0))),
        compiler_params=pltpu.CompilerParams(
            dimension_semantics=("parallel", "arbitrary"),
            vmem_limit_bytes=vmem_limit),
    )(x2)

    # --- tiny combine + fused affine coefficients (negligible JAX ops) ------
    s = sums.reshape(16, k, H).sum(axis=(0, 1))           # (H,)
    sq = sqs.reshape(16, k, H).sum(axis=(0, 1))           # (H,)
    inv_n = 1.0 / N
    mean = s * inv_n
    var = jnp.maximum(sq * inv_n - mean * mean, 0.0)      # biased (training fwd)
    inv = lax.rsqrt(var + eps)
    scale = gamma.astype(jnp.float32) * inv
    shift = beta.astype(jnp.float32) - mean * scale
    scale2 = jnp.tile(scale, (k,)).reshape(1, h2)         # lane j -> channel j % H
    shift2 = jnp.tile(shift, (k,)).reshape(1, h2)

    # --- pass 2: normalize (parallel over row tiles; tail block clipped) ----
    out = pl.pallas_call(
        _normalize_kernel,
        out_shape=jax.ShapeDtypeStruct((n2, h2), x.dtype),
        grid=(n_tiles,),
        in_specs=[pl.BlockSpec((tile_n, h2), lambda i: (i, 0)),
                  pl.BlockSpec((1, h2), lambda i: (0, 0)),
                  pl.BlockSpec((1, h2), lambda i: (0, 0))],
        out_specs=pl.BlockSpec((tile_n, h2), lambda i: (i, 0)),
        compiler_params=pltpu.CompilerParams(
            dimension_semantics=("parallel",),
            vmem_limit_bytes=vmem_limit),
    )(x2, scale2, shift2)

    return out.reshape(B, T, H)


def _reference(x, gamma, beta):
    # pure-JAX reference mirroring PyTorch BatchNorm1d training forward
    xf = x.astype(jnp.float32)
    mean = jnp.mean(xf, axis=(0, 1), keepdims=True)
    var = jnp.mean((xf - mean) ** 2, axis=(0, 1), keepdims=True)
    y = (xf - mean) * lax.rsqrt(var + EPS) * gamma + beta
    return y.astype(x.dtype)


if __name__ == "__main__":
    key = jax.random.PRNGKey(0)
    kx, kg, kb = jax.random.split(key, 3)

    B, T, H = 2, 8, 32
    x = jax.random.normal(kx, (B, T, H), dtype=jnp.float32)
    # nn.BatchNorm1d(H): weight=(H,), bias=(H,). Non-trivial values to
    # exercise the affine path.
    gamma = 1.0 + 0.1 * jax.random.normal(kg, (H,), dtype=jnp.float32)
    beta = 0.1 * jax.random.normal(kb, (H,), dtype=jnp.float32)

    y = batchnorm(x, gamma, beta)
    jax.block_until_ready(y)

    y_ref = _reference(x, gamma, beta)
    assert y.shape == (B, T, H)
    assert jnp.allclose(y, y_ref, atol=1e-4, rtol=1e-4), float(
        jnp.max(jnp.abs(y.astype(jnp.float32) - y_ref.astype(jnp.float32))))

    print("KERNEL_OK")
</pallas_src>

<mosaic_0001>
module attributes {stable_mosaic.version = 11 : i64} {
  func.func @_stats_kernel(%arg0: i32, %arg1: i32, %arg2: memref<256x512xf32, #tpu.memory_space<vmem>>, %arg3: memref<8x512xf32, #tpu.memory_space<vmem>>, %arg4: memref<8x512xf32, #tpu.memory_space<vmem>>) attributes {dimension_semantics = [#tpu.dimension_semantics<parallel>, #tpu.dimension_semantics<arbitrary>], iteration_bounds = array<i64: 2, 1>, scalar_prefetch = 0 : i64, scratch_operands = 0 : i64, tpu.core_type = #tpu.core_type<tc>, window_params = [{transform_indices = @transform_0, window_bounds = array<i64: 256, 512>}, {transform_indices = @transform_1, window_bounds = array<i64: 8, 512>}, {transform_indices = @transform_2, window_bounds = array<i64: 8, 512>}]} {
    %c0_i32 = arith.constant 0 : i32
    %0 = arith.cmpi eq, %arg1, %c0_i32 : i32
    %1 = arith.extui %0 : i1 to i32
    %c0_i32_0 = arith.constant 0 : i32
    %2 = arith.cmpi ne, %1, %c0_i32_0 : i32
    scf.if %2 {
      %cst_15 = arith.constant 0.000000e+00 : f32
      %30 = vector.broadcast %cst_15 : f32 to vector<8x512xf32>
      %c0_16 = arith.constant 0 : index
      %c0_17 = arith.constant 0 : index
      %31 = vector.load %arg3[%c0_16, %c0_17] : memref<8x512xf32, #tpu.memory_space<vmem>>, vector<8x512xf32>
      tpu.vector_store %arg3[%c0_16, %c0_17], %30 {strides = array<i32>} : memref<8x512xf32, #tpu.memory_space<vmem>>, vector<8x512xf32>,
      %cst_18 = arith.constant 0.000000e+00 : f32
      %32 = vector.broadcast %cst_18 : f32 to vector<8x512xf32>
      %c0_19 = arith.constant 0 : index
      %c0_20 = arith.constant 0 : index
      %33 = vector.load %arg4[%c0_19, %c0_20] : memref<8x512xf32, #tpu.memory_space<vmem>>, vector<8x512xf32>
      tpu.vector_store %arg4[%c0_19, %c0_20], %32 {strides = array<i32>} : memref<8x512xf32, #tpu.memory_space<vmem>>, vector<8x512xf32>,
    } else {
    }
    %c1_i32 = arith.constant 1 : i32
    %3 = arith.muli %arg0, %c1_i32 : i32
    %4 = arith.addi %3, %arg1 : i32
    %c256_i32 = arith.constant 256 : i32
    %5 = arith.muli %4, %c256_i32 : i32
    %c1_i32_1 = arith.constant 1 : i32
    %6 = arith.subi %c1_i32_1, %5 : i32
    %7 = tpu.iota {dimensions = array<i32: 0>} : vector<256x1xi32>
    %c0_i32_2 = arith.constant 0 : i32
    %c256_i32_3 = arith.constant 256 : i32
    %8 = arith.muli %c0_i32_2, %c256_i32_3 : i32
    %9 = tpu.assume_multiple %8, 256 : i32
    %10 = arith.index_cast %9 : i32 to index
    %c0 = arith.constant 0 : index
    %11 = vector.load %arg2[%10, %c0] : memref<256x512xf32, #tpu.memory_space<vmem>>, vector<256x512xf32>
    %12 = vector.broadcast %9 : i32 to vector<256x1xi32>
    %13 = arith.addi %12, %7 : vector<256x1xi32>
    %14 = vector.broadcast %6 : i32 to vector<256x1xi32>
    %15 = arith.cmpi slt, %13, %14 : vector<256x1xi32>
    %cst = arith.constant 0.000000e+00 : f32
    %16 = vector.shape_cast %15 : vector<256x1xi1> to vector<256x1xi1>
    %17 = vector.broadcast %16 : vector<256x1xi1> to vector<256x512xi1>
    %18 = vector.broadcast %cst : f32 to vector<256x512xf32>
    %19 = arith.select %17, %11, %18 : vector<256x512xi1>, vector<256x512xf32>
    %20 = vector.shape_cast %19 : vector<256x512xf32> to vector<32x8x512xf32>
    %c0_4 = arith.constant 0 : index
    %c0_5 = arith.constant 0 : index
    %21 = vector.load %arg3[%c0_4, %c0_5] : memref<8x512xf32, #tpu.memory_space<vmem>>, vector<8x512xf32>
    %cst_6 = arith.constant dense<0.000000e+00> : vector<8x512xf32>
    %22 = vector.multi_reduction <add>, %20, %cst_6 [0] : vector<32x8x512xf32> to vector<8x512xf32>
    %23 = arith.addf %21, %22 : vector<8x512xf32>
    %c0_7 = arith.constant 0 : index
    %c0_8 = arith.constant 0 : index
    %24 = vector.load %arg3[%c0_7, %c0_8] : memref<8x512xf32, #tpu.memory_space<vmem>>, vector<8x512xf32>
    tpu.vector_store %arg3[%c0_7, %c0_8], %23 {strides = array<i32>} : memref<8x512xf32, #tpu.memory_space<vmem>>, vector<8x512xf32>,
    %c0_9 = arith.constant 0 : index
    %c0_10 = arith.constant 0 : index
    %25 = vector.load %arg4[%c0_9, %c0_10] : memref<8x512xf32, #tpu.memory_space<vmem>>, vector<8x512xf32>
    %26 = arith.mulf %20, %20 : vector<32x8x512xf32>
    %cst_11 = arith.constant dense<0.000000e+00> : vector<8x512xf32>
    %27 = vector.multi_reduction <add>, %26, %cst_11 [0] : vector<32x8x512xf32> to vector<8x512xf32>
    %28 = arith.addf %25, %27 : vector<8x512xf32>
    %c0_12 = arith.constant 0 : index
    %c0_13 = arith.constant 0 : index
    %29 = vector.load %arg4[%c0_12, %c0_13] : memref<8x512xf32, #tpu.memory_space<vmem>>, vector<8x512xf32>
    tpu.vector_store %arg4[%c0_12, %c0_13], %28 {strides = array<i32>} : memref<8x512xf32, #tpu.memory_space<vmem>>, vector<8x512xf32>,
    %c1_i32_14 = arith.constant 1 : i32
    return
  }
  func.func @transform_0(%arg0: i32, %arg1: i32) -> (i32, i32) {
    %c1_i32 = arith.constant 1 : i32
    %0 = arith.muli %arg0, %c1_i32 : i32
    %1 = arith.addi %0, %arg1 : i32
    %c0_i32 = arith.constant 0 : i32
    %2 = arith.minsi %1, %c0_i32 : i32
    %c0_i32_0 = arith.constant 0 : i32
    %c0_i32_1 = arith.constant 0 : i32
    return %2, %c0_i32_0 : i32, i32
  }
  func.func @transform_1(%arg0: i32, %arg1: i32) -> (i32, i32) {
    %c0_i32 = arith.constant 0 : i32
    %c0_i32_0 = arith.constant 0 : i32
    return %arg0, %c0_i32 : i32, i32
  }
  func.func @transform_2(%arg0: i32, %arg1: i32) -> (i32, i32) {
    %c0_i32 = arith.constant 0 : i32
    %c0_i32_0 = arith.constant 0 : i32
    return %arg0, %c0_i32 : i32, i32
  }
}

</mosaic_0001>

<bundles_post_ra>
// kernel: tpu_custom_call.1
= control target key start
LH: loop header
LB: loop body
LE: loop exit
PB: predicated region body
PF: predicated region fallthrough
CT: control target
= control target key end

     0   :  { %8 = vsyncpa [#allocation3], 0  ;;  %s6982_s0 = inlined_call_operand.hbm [shape: f32[1,512], index: 0, kind: input, shape index: {}]   ;;  %s6983_s1 = inlined_call_operand.hbm [shape: f32[16,512], index: 1, kind: output, shape index: {0}]   ;;  %s6984_s2 = inlined_call_operand.hbm [shape: f32[16,512], index: 2, kind: output, shape index: {1}]  }
   0x1   :  { %10 = vsyncpa [#allocation3 + $0x1], 0 }
   0x2   :  { %11 = vsyncpa [#allocation4], 0 }
   0x3   :  { %13 = vsyncpa [#allocation4 + $0x1], 0 }
   0x4   :  { %14 = vsyncpa [#allocation7], 0 }
   0x5   :  { %16 = vsyncpa [#allocation7 + $0x1], 0  ;;  %s4433_s9 = smov 0   ;;  %s4435_s10 = smov 0  }
   0x6   :  { %s4437_s11 = smov 0   ;;  %s4439_s12 = smov 0  }
   0x7   :  { %s4441_s13 = smov 0   ;;  %s4443_s14 = smov 0  }
   0x8   :  { %s4445_s15 = smov 0   ;;  %s4447_s16 = smov 0  }
   0x9 LB: > { %s3875_s17 = sadd.s32 4294967295, %s4410_s16   ;;  %s3876_s18 = sadd.s32 4294967294, %s4410_s16   ;;  %s4410_s16 = sphi %s4447_s16, %s22_s16   ;;  %s4406_s15 = sphi %s4445_s15, %s7794_s15   ;;  %s4402_s14 = sphi %s4443_s14, %s7793_s14   ;;  %s4398_s13 = sphi %s4441_s13, %s6972_s13   ;;  %s4394_s12 = sphi %s4439_s12, %s7792_s12   ;;  %s4390_s11 = sphi %s4437_s11, %s7791_s11   ;;  %s4386_s10 = sphi %s4435_s10, %s7790_s10   ;;  %s4382_s9 = sphi %s4433_s9, %s7789_s9  }
   0xa   : > { %s34_s19 = sadd.s32 1, %s4406_s15  ;;  %p4379_p1 = scmp.ne.s32.totalorder %s4398_s13, 0 }
   0xb   : > { %p36_p0 = scmp.ge.s32.totalorder %s34_s19, 2  ;;  %p55_p2 = scmp.eq.s32.totalorder %s4410_s16, 0 }
   0xc   : > { %p60_p3 = scmp.ne.s32.totalorder %s4398_s13, %s4394_s12  ;;  %p61_p5 = scmp.eq.s32.totalorder %s3875_s17, 0 }
   0xd   : > { %s7796_s19 = smov (%p36_p0, %s34_s19), 0  ;;  %p4479_p4 = por %p4379_p1, %p55_p2 }
   0xe   : > { %p4483_p6 = por %p61_p5, %p60_p3  ;;  %s70_s22 = ssub.s32 %s4406_s15, %s7796_s19 }
   0xf   : > { %p71_p7 = scmp.eq.s32.totalorder %s70_s22, 0  ;;  %s73_s23 = sadd.s32 1, %s4390_s11 }
  0x10   : > { %p83_p8 = scmp.ne.s32.totalorder %s4390_s11, %s4386_s10  ;;  %p84_p9 = scmp.eq.s32.totalorder %s3875_s17, 1 }
  0x11   : > { %s4491_s24 = scalar_select %p71_p7, %s4390_s11, %s73_s23  }
  0x12   : > { %p89_p10 = scmp.ne.s32.totalorder %s4386_s10, %s4382_s9  ;;  %p90_p11 = scmp.eq.s32.totalorder %s3876_s18, 1 }
  0x13   : > { %p4497_p12 = por %p84_p9, %p83_p8  ;;  %p3878_p0 = scmp.ge.s32.totalorder %s4410_s16, 2 }
  0x14   : > { %p4501_p13 = por %p90_p11, %p89_p10 }
  0x15   : > { %132 = sbr.rel (%p3878_p0) target bundleno = 49 (0x31), region = 16 }
  0x1a   : > { %135 = sbr.rel (!%p4479_p4) target bundleno = 49 (0x31), region = 20 }
  0x1f   : > { %150 = vsyncadd [#allocation3], 16320  ;;  %s4412_s27 = smov [#allocation2]   ;;  %s4251_s3 = scalar_lea.hbm %s6982_s0, 64 }
  0x20   : > { %s156_s28 = sshll.u32 %s4412_s27, 4  ;;  %p4252_p1 = scmp.ne.s32.totalorder %s6982_s0, %s4251_s3  ;;  %s157_s28 = int_to_ptr.vmem [resolvable:$true] %s156_s28 }
  0x21   : > { %p4257_p2 = scmp.lt.s32.totalorder %s4251_s3, %s4251_s3 }
  0x23   : > { %p4259_p3 = pnand %p4257_p2, %p4252_p1 }
  0x25   : > { %4262 = shalt.err (!%p4259_p3)
}
  0x26   : > { %s4263_s6 = scalar_lea.vmem %s157_s28, 64  ;;  %s4269_s7 = scalar_lea.vmem %s157_s28, 32768 }
  0x27   : > { %p4264_p5 = scmp.ne.s32.totalorder %s157_s28, %s4263_s6  ;;  %p4270_p7 = scmp.lt.s32.totalorder %s157_s28, %s157_s28 }
  0x28   : > { %p4271_p4 = scmp.lt.s32.totalorder %s4269_s7, %s4263_s6 }
  0x2a   : > { %p4272_p8 = por %p4271_p4, %p4270_p7 }
  0x2c   : > { %p4273_p9 = pnand %p4272_p8, %p4264_p5 }
  0x2e   : > { %4276 = shalt.err (!%p4273_p9)
}
  0x2f   : > { %s4413_s8 = smov 64   ;;  %s4414_s12 = smov 4  }
  0x30   : > { %162 = dma.hbm_to_vmem [thread:$0]  %s6982_s0, 64, %s157_s28, [#allocation3], %s4413_s8, %s4413_s8, %s4414_s12  }
  0x31 PF: > { %p3888_p10 = scmp.ge.s32.totalorder %s4410_s16, 1  ;;  %p164_p11 = scmp.lt.s32.totalorder %s4410_s16, 3 }
  0x33   : > { %p165_p1 = pnand %p3888_p10, %p164_p11 }
  0x35   : > { %168 = sbr.rel (%p165_p1) target bundleno = 355 (0x163), region = 24 }
  0x3a   : > { %s170_s20 = sand.u32 1, %s4398_s13  }
  0x3b   : > { %s3889_s22 = sshll.u32 %s170_s20, 10  ;;  %s171_s23 = scalar_lea.sflag [#allocation3], %s170_s20 }
  0x3c   : > { %s4522_s27 = scalar_lea.vmem [#allocation2], %s3889_s22 }
  0x3d   : > { %4366 = dma.done.wait (%p4483_p6), %s171_s23, 16384  }
  0x3e   : > { %4368 = vsyncadd (%p4483_p6), %s171_s23, 4294950912  ;;  %v222_v0 = vlaneseq  ;;  %v4415_v1 = vmov 1966171168   ;;  %s3892_s28 = sshll.u32 %s4402_s14, 8  ;;  %s6503_s29 = sand.u32 1, %s4386_s10  }
  0x3f   : > { %v904_v2 = vunpack.c.l.s4 %v4415_v1  ;;  %v4123_v5 = vld.sshfl [vmem:[%s4522_s27] sm:$0xff pattern:$0x75316420]  ;;  %v4124_v6 = vld.sshfl [vmem:[%s4522_s27 + $0x8] sm:$0xff pattern:$0x75316420] }
  0x40   : > { %v4528_v3 = vshrl.u32 %v222_v0, 7  ;;  %s221_s21 = ssub.s32 1, %s3892_s28  ;;  %v4125_v12 = vld.sshfl [vmem:[%s4522_s27 + $0x10] sm:$0xff pattern:$0x75316420]  ;;  %v931_v37 = vcombine.low %v4123_v5, %v4124_v6  ;;  %v932_v48 = vcombine.high %v4123_v5, %v4124_v6  ;;  %s3890_s30 = sshll.u32 %s6503_s29, 5 }
  0x41   : > { %v905_v4 = vunpack.c.0.s8 %v904_v2  ;;  %v4126_v13 = vld.sshfl [vmem:[%s4522_s27 + $0x18] sm:$0xff pattern:$0x75316420]  ;;  %v4127_v20 = vld.sshfl [vmem:[%s4522_s27 + $0x20] sm:$0xff pattern:$0x75316420]  ;;  %v4578_v24 = vstv %s221_s21 }
  0x42   : > { %v4537_v8 = vadd.s32 8, %v4528_v3  ;;  %v4540_v9 = vadd.s32 16, %v4528_v3  ;;  %v4543_v10 = vadd.s32 24, %v4528_v3  ;;  %v4546_v11 = vadd.s32 32, %v4528_v3  ;;  %s3904_s3 = sshll.u32 %s4402_s14, 9  ;;  %s192_s4 = scalar_lea.vmem [#allocation5], %s3890_s30 }
  0x43   : > { %v4534_v7 = vsub.s32 %v905_v4, %v4528_v3  ;;  %v4551_v14 = vadd.s32 40, %v4528_v3  ;;  %v4554_v15 = vadd.s32 48, %v4528_v3  ;;  %v4557_v16 = vadd.s32 56, %v4528_v3  ;;  %v4128_v25 = vld.sshfl [vmem:[%s4522_s27 + $0x28] sm:$0xff pattern:$0x75316420]  ;;  %s6665_s8 = scalar_lea.hbm %s6983_s1, %s3904_s3 }
  0x44   : > { %v4560_v17 = vadd.s32 64, %v4528_v3  ;;  %v4563_v18 = vadd.s32 72, %v4528_v3  ;;  %v4566_v19 = vadd.s32 80, %v4528_v3  ;;  %v4570_v21 = vadd.s32 88, %v4528_v3  ;;  %s3751_s5 = sshll.u32 %s192_s4, 4  ;;  %s3732_s12 = scalar_lea.sflag [#allocation4], %s6503_s29  ;;  %s6667_s5 = int_to_ptr.vmem [resolvable:$true] %s3751_s5 }
  0x45   : > { %v4573_v22 = vadd.s32 96, %v4528_v3  ;;  %v4576_v23 = vadd.s32 104, %v4528_v3  ;;  %v4129_v26 = vld.sshfl [vmem:[%s4522_s27 + $0x30] sm:$0xff pattern:$0x75316420]  ;;  %v4584_v28 = vadd.s32 112, %v4528_v3  ;;  %v933_v42 = vcombine.low %v4125_v12, %v4126_v13 }
  0x46   : > { %7271 = vst [vmem:[#allocation11_spill] sm:$0xff] %v4566_v19  ;;  %7272 = vst [vmem:[#allocation12_spill] sm:$0xff] %v4570_v21  ;;  %v4130_v27 = vld.sshfl [vmem:[%s4522_s27 + $0x38] sm:$0xff pattern:$0x75316420]  ;;  %v4587_v29 = vadd.s32 120, %v4528_v3  ;;  %v934_v49 = vcombine.high %v4125_v12, %v4126_v13  ;;  %v4638_v54 = vrot.slane %v931_v37, %v4534_v7  ;;  %v999_v57 = vcombine.low %v4127_v20, %v4128_v25 }
  0x47   : > { %7273 = vst [vmem:[#allocation13_spill] sm:$0xff] %v4573_v22  ;;  %7274 = vst [vmem:[#allocation14_spill] sm:$0xff] %v4576_v23  ;;  %v4590_v30 = vadd.s32 128, %v4528_v3  ;;  %v4593_v31 = vadd.s32 136, %v4528_v3  ;;  %v4596_v32 = vadd.s32 144, %v4528_v3  ;;  %v4599_v33 = vadd.s32 152, %v4528_v3 }
  0x48   : > { %7275 = vst [vmem:[#allocation15_spill] sm:$0xff] %v4584_v28  ;;  %7276 = vst [vmem:[#allocation16_spill] sm:$0xff] %v4587_v29  ;;  %v4602_v34 = vadd.s32 160, %v4528_v3  ;;  %v4605_v35 = vadd.s32 168, %v4528_v3  ;;  %v4608_v36 = vadd.s32 176, %v4528_v3  ;;  %v4612_v39 = vadd.s32 184, %v4528_v3 }
  0x49   : > { %7277 = vst [vmem:[#allocation17_spill] sm:$0xff] %v4590_v30  ;;  %7278 = vst [vmem:[#allocation18_spill] sm:$0xff] %v4593_v31  ;;  %v4131_v38 = vld.sshfl [vmem:[%s4522_s27 + $0x40] sm:$0xff pattern:$0x75316420]  ;;  %v4615_v40 = vadd.s32 192, %v4528_v3  ;;  %v1000_v58 = vcombine.high %v4127_v20, %v4128_v25  ;;  %v1001_v59 = vcombine.low %v4129_v26, %v4130_v27  ;;  %v1002_v60 = vcombine.high %v4129_v26, %v4130_v27 }
  0x4a   : > { %7279 = vst [vmem:[#allocation19_spill] sm:$0xff] %v4596_v32  ;;  %7280 = vst [vmem:[#allocation20_spill] sm:$0xff] %v4599_v33  ;;  %v4618_v41 = vadd.s32 200, %v4528_v3  ;;  %v4132_v43 = vld.sshfl [vmem:[%s4522_s27 + $0x48] sm:$0xff pattern:$0x75316420]  ;;  %v4643_v61 = vrot.slane %v933_v42, %v4534_v7  ;;  %v4646_v62 = vrot.slane %v932_v48, %v4534_v7  ;;  %v4649_v63 = vrot.slane %v934_v49, %v4534_v7 }
  0x4b   : > { %7281 = vst [vmem:[#allocation21_spill] sm:$0xff] %v4602_v34  ;;  %7282 = vst [vmem:[#allocation22_spill] sm:$0xff] %v4605_v35  ;;  %v4133_v44 = vld.sshfl [vmem:[%s4522_s27 + $0x50] sm:$0xff pattern:$0x75316420]  ;;  %v4624_v46 = vadd.s32 208, %v4528_v3  ;;  %v4660_v5 = vrot.slane %v999_v57, %v4534_v7  ;;  %v4663_v6 = vrot.slane %v1000_v58, %v4534_v7  ;;  %v4666_v12 = vrot.slane %v1001_v59, %v4534_v7 }
  0x4c   : > { %7283 = vst [vmem:[#allocation23_spill] sm:$0xff] %v4608_v36  ;;  %7284 = vst [vmem:[#allocation24_spill] sm:$0xff] %v4612_v39  ;;  %v4134_v45 = vld.sshfl [vmem:[%s4522_s27 + $0x58] sm:$0xff pattern:$0x75316420]  ;;  %v4627_v47 = vadd.s32 216, %v4528_v3  ;;  %v4669_v13 = vrot.slane %v1002_v60, %v4534_v7  ;;  %v1067_v26 = vcombine.low %v4131_v38, %v4132_v43  ;;  %v1068_v49 = vcombine.high %v4131_v38, %v4132_v43 }
  0x4d   : > { %7285 = vst [vmem:[#allocation25_spill] sm:$0xff] %v4615_v40  ;;  %7286 = vst [vmem:[#allocation26_spill] sm:$0xff] %v4618_v41  ;;  %v4135_v50 = vld.sshfl [vmem:[%s4522_s27 + $0x60] sm:$0xff pattern:$0x75316420]  ;;  %v4632_v52 = vadd.s32 224, %v4528_v3  ;;  %v1069_v27 = vcombine.low %v4133_v44, %v4134_v45  ;;  %v1070_v57 = vcombine.high %v4133_v44, %v4134_v45  ;;  %vm547_vm0 = vcmp.lt.s32.totalorder %v4528_v3, %v4578_v24 }
  0x4e   : > { %7287 = vst [vmem:[#allocation27_spill] sm:$0xff] %v4624_v46  ;;  %7288 = vst [vmem:[#allocation28_spill] sm:$0xff] %v4627_v47  ;;  %v4136_v51 = vld.sshfl [vmem:[%s4522_s27 + $0x68] sm:$0xff pattern:$0x75316420]  ;;  %v4635_v53 = vadd.s32 232, %v4528_v3  ;;  %v4692_v45 = vrot.slane %v1067_v26, %v4534_v7  ;;  %vm548_vm1 = vcmp.lt.s32.totalorder %v4537_v8, %v4578_v24  ;;  %vm549_vm2 = vcmp.lt.s32.totalorder %v4540_v9, %v4578_v24 }
  0x4f   : > { %7289 = vst [vmem:[#allocation29_spill] sm:$0xff] %v4632_v52  ;;  %v4137_v55 = vld.sshfl [vmem:[%s4522_s27 + $0x70] sm:$0xff pattern:$0x75316420]  ;;  %v4652_v0 = vadd.s32 240, %v4528_v3  ;;  %v4655_v1 = vadd.s32 248, %v4528_v3  ;;  %v1135_v58 = vcombine.low %v4135_v50, %v4136_v51  ;;  %v1136_v59 = vcombine.high %v4135_v50, %v4136_v51 }
  0x50   : > { %7290 = vst [vmem:[#allocation30_spill] sm:$0xff] %v4635_v53  ;;  %v4138_v56 = vld.sshfl [vmem:[%s4522_s27 + $0x78] sm:$0xff pattern:$0x75316420]  ;;  %v4695_v50 = vrot.slane %v1069_v27, %v4534_v7  ;;  %vm550_vm3 = vcmp.lt.s32.totalorder %v4543_v10, %v4578_v24  ;;  %vm551_vm4 = vcmp.lt.s32.totalorder %v4546_v11, %v4578_v24  ;;  %vm552_vm5 = vcmp.lt.s32.totalorder %v4551_v14, %v4578_v24  ;;  %s4277_s17 = scalar_lea.vmem %s6667_s5, 512  ;;  %s4416_s18 = smov [#allocation5]  }
  0x51   : > { %7291 = vst [vmem:[#allocation31_spill] sm:$0xff] %v4652_v0  ;;  %7292 = vst [vmem:[#allocation32_spill] sm:$0xff] %v4655_v1  ;;  %v4139_v2 = vld.sshfl [vmem:[%s4522_s27 + $0x80] sm:$0xff pattern:$0x75316420]  ;;  %v1137_v60 = vcombine.low %v4137_v55, %v4138_v56  ;;  %v4700_v1 = vrot.slane %v1068_v49, %v4534_v7  ;;  %v4703_v0 = vrot.slane %v1070_v57, %v4534_v7  ;;  %p4278_p6 = scmp.ne.s32.totalorder %s6667_s5, %s4277_s17  ;;  %s4281_s20 = sshll.u32 %s4416_s18, 4  ;;  %s4282_s20 = int_to_ptr.vmem [resolvable:$false] %s4281_s20 }
  0x52   : > { %v4140_v4 = vld.sshfl [vmem:[%s4522_s27 + $0x88] sm:$0xff pattern:$0x75316420]  ;;  %v4141_v37 = vld.sshfl [vmem:[%s4522_s27 + $0x90] sm:$0xff pattern:$0x75316420]  ;;  %v1138_v48 = vcombine.high %v4137_v55, %v4138_v56  ;;  %v4710_v26 = vrot.slane %v1135_v58, %v4534_v7  ;;  %v4713_v27 = vrot.slane %v1136_v59, %v4534_v7  ;;  %vm553_vm6 = vcmp.lt.s32.totalorder %v4554_v15, %v4578_v24  ;;  %p4284_p5 = scmp.lt.s32.totalorder %s6667_s5, %s4282_s20 }
  0x53   : > { %v4142_v42 = vld.sshfl [vmem:[%s4522_s27 + $0x98] sm:$0xff pattern:$0x75316420]  ;;  %v4143_v20 = vld.sshfl [vmem:[%s4522_s27 + $0xa0] sm:$0xff pattern:$0x75316420]  ;;  %v4716_v49 = vrot.slane %v1137_v60, %v4534_v7  ;;  %v1203_v51 = vcombine.low %v4139_v2, %v4140_v4  ;;  %v1204_v56 = vcombine.high %v4139_v2, %v4140_v4  ;;  %vm554_vm7 = vcmp.lt.s32.totalorder %v4557_v16, %v4578_v24  ;;  %p4279_p2 = pnand %p4278_p6, %p4497_p12 }
  0x54   : > { %v4144_v38 = vld.sshfl [vmem:[%s4522_s27 + $0xa8] sm:$0xff pattern:$0x75316420]  ;;  %v4145_v43 = vld.sshfl [vmem:[%s4522_s27 + $0xb0] sm:$0xff pattern:$0x75316420]  ;;  %v1205_v47 = vcombine.low %v4141_v37, %v4142_v42  ;;  %v1206_v46 = vcombine.high %v4141_v37, %v4142_v42  ;;  %v4730_v40 = vrot.slane %v1138_v48, %v4534_v7  ;;  %vm555_vm8 = vcmp.lt.s32.totalorder %v4560_v17, %v4578_v24 }
  0x55   : > { %v4146_v44 = vld.sshfl [vmem:[%s4522_s27 + $0xb8] sm:$0xff pattern:$0x75316420]  ;;  %v4706_v25 = vld.sshfl [vmem:[%s4522_s27 + $0xc0] sm:$0xff pattern:$0x75316420]  ;;  %v4738_v4 = vrot.slane %v1203_v51, %v4534_v7  ;;  %v1271_v37 = vcombine.low %v4143_v20, %v4144_v38  ;;  %v4741_v58 = vrot.slane %v1204_v56, %v4534_v7  ;;  %v1272_v59 = vcombine.high %v4143_v20, %v4144_v38  ;;  %p4280_p3 = pneg %p4279_p2 }
  0x56   : > { %v4148_v53 = vld.sshfl [vmem:[%s4522_s27 + $0xc8] sm:$0xff pattern:$0x75316420]  ;;  %v4149_v57 = vld.sshfl [vmem:[%s4522_s27 + $0xd0] sm:$0xff pattern:$0x75316420]  ;;  %v1273_v42 = vcombine.low %v4145_v43, %v4146_v44  ;;  %v4744_v60 = vrot.slane %v1205_v47, %v4534_v7  ;;  %v4747_v48 = vrot.slane %v1206_v46, %v4534_v7  ;;  %v1274_v51 = vcombine.high %v4145_v43, %v4146_v44 }
  0x57   : > { %v4150_v52 = vld.sshfl [vmem:[%s4522_s27 + $0xd8] sm:$0xff pattern:$0x75316420]  ;;  %v4151_v41 = vld.sshfl [vmem:[%s4522_s27 + $0xe0] sm:$0xff pattern:$0x75316420]  ;;  %v1339_v55 = vcombine.low %v4706_v25, %v4148_v53  ;;  %v4757_v33 = vrot.slane %v1271_v37, %v4534_v7  ;;  %v4770_v2 = vrot.slane %v1272_v59, %v4534_v7  ;;  %v1340_v38 = vcombine.high %v4706_v25, %v4148_v53 }
  0x58   : > { %v4152_v39 = vld.sshfl [vmem:[%s4522_s27 + $0xe8] sm:$0xff pattern:$0x75316420]  ;;  %v4153_v36 = vld.sshfl [vmem:[%s4522_s27 + $0xf0] sm:$0xff pattern:$0x75316420]  ;;  %v1341_v34 = vcombine.low %v4149_v57, %v4150_v52  ;;  %v4760_v46 = vrot.slane %v1273_v42, %v4534_v7  ;;  %v4776_v56 = vrot.slane %v1274_v51, %v4534_v7  ;;  %v1342_v32 = vcombine.high %v4149_v57, %v4150_v52 }
  0x59   : > { %v4154_v35 = vld.sshfl [vmem:[%s4522_s27 + $0xf8] sm:$0xff pattern:$0x75316420]  ;;  %7293 = vst [vmem:[#allocation33_spill] sm:$0xff] %v4757_v33  ;;  %7295 = vst [vmem:[#allocation35_spill] sm:$0xff] %v4770_v2  ;;  %v4780_v43 = vrot.slane %v1339_v55, %v4534_v7  ;;  %v1407_v59 = vcombine.low %v4151_v41, %v4152_v39  ;;  %v1408_v31 = vcombine.high %v4151_v41, %v4152_v39  ;;  %s4283_s22 = scalar_lea.vmem %s4282_s20, 1024 }
  0x5a   : > { %7294 = vst [vmem:[#allocation34_spill] sm:$0xff] %v4760_v46  ;;  %v4155_v20 = vld.sshfl [vmem:[%s4522_s27 + $0x100] sm:$0xff pattern:$0x75316420]  ;;  %7296 = vst [vmem:[#allocation36_spill] sm:$0xff] %v4776_v56  ;;  %v4783_v44 = vrot.slane %v1341_v34, %v4534_v7  ;;  %v1409_v30 = vcombine.low %v4153_v36, %v4154_v35  ;;  %v1410_v57 = vcombine.high %v4153_v36, %v4154_v35  ;;  %p4285_p7 = scmp.lt.s32.totalorder %s4283_s22, %s4277_s17 }
  0x5b   : > { %v4156_v37 = vld.sshfl [vmem:[%s4522_s27 + $0x108] sm:$0xff pattern:$0x75316420]  ;;  %v4157_v47 = vld.sshfl [vmem:[%s4522_s27 + $0x110] sm:$0xff pattern:$0x75316420]  ;;  %v4800_v55 = vrot.slane %v1340_v38, %v4534_v7  ;;  %v4803_v51 = vrot.slane %v1342_v32, %v4534_v7  ;;  %v4809_v35 = vrot.slane %v1407_v59, %v4534_v7  ;;  %v4812_v36 = vrot.slane %v1408_v31, %v4534_v7 }
  0x5c   : > { %v4158_v42 = vld.sshfl [vmem:[%s4522_s27 + $0x118] sm:$0xff pattern:$0x75316420]  ;;  %7297 = vst [vmem:[#allocation37_spill] sm:$0xff] %v4780_v43  ;;  %7298 = vst [vmem:[#allocation38_spill] sm:$0xff] %v4783_v44  ;;  %v4815_v41 = vrot.slane %v1409_v30, %v4534_v7  ;;  %v4823_v22 = vrot.slane %v1410_v57, %v4534_v7  ;;  %v1475_v52 = vcombine.low %v4155_v20, %v4156_v37  ;;  %p4286_p4 = por %p4285_p7, %p4284_p5 }
  0x5d   : > { %v4159_v29 = vld.sshfl [vmem:[%s4522_s27 + $0x120] sm:$0xff pattern:$0x75316420]  ;;  %v4160_v53 = vld.sshfl [vmem:[%s4522_s27 + $0x128] sm:$0xff pattern:$0x75316420]  ;;  %v1477_v21 = vcombine.low %v4157_v47, %v4158_v42  ;;  %v1476_v59 = vcombine.high %v4155_v20, %v4156_v37  ;;  %v1478_v56 = vcombine.high %v4157_v47, %v4158_v42  ;;  %v7399_v9 = vcombine.high %v4710_v26, %v4716_v49 }
  0x5e   : > { %v4161_v34 = vld.sshfl [vmem:[%s4522_s27 + $0x130] sm:$0xff pattern:$0x75316420]  ;;  %v4162_v25 = vld.sshfl [vmem:[%s4522_s27 + $0x138] sm:$0xff pattern:$0x75316420]  ;;  %v1543_v44 = vcombine.low %v4159_v29, %v4160_v53  ;;  %v4838_v31 = vrot.slane %v1475_v52, %v4534_v7  ;;  %v1544_v47 = vcombine.high %v4159_v29, %v4160_v53  ;;  %vm556_vm9 = vcmp.lt.s32.totalorder %v4563_v18, %v4578_v24  ;;  %p4287_p8 = pnand %p4286_p4, %p4280_p3 }
  0x5f   : > { %7299 = vst [vmem:[#allocation39_spill] sm:$0xff] %v4800_v55  ;;  %7300 = vst [vmem:[#allocation40_spill] sm:$0xff] %v4803_v51  ;;  %v4163_v28 = vld.sshfl [vmem:[%s4522_s27 + $0x140] sm:$0xff pattern:$0x75316420]  ;;  %v1545_v43 = vcombine.low %v4161_v34, %v4162_v25  ;;  %v4841_v20 = vrot.slane %v1477_v21, %v4534_v7  ;;  %v4848_v32 = vrot.slane %v1476_v59, %v4534_v7 }
  0x60   : > { %7301 = vst [vmem:[#allocation41_spill] sm:$0xff] %v4809_v35  ;;  %7302 = vst [vmem:[#allocation42_spill] sm:$0xff] %v4812_v36  ;;  %v4164_v38 = vld.sshfl [vmem:[%s4522_s27 + $0x148] sm:$0xff pattern:$0x75316420]  ;;  %v4851_v33 = vrot.slane %v1478_v56, %v4534_v7  ;;  %v1546_v52 = vcombine.high %v4161_v34, %v4162_v25  ;;  %v4854_v21 = vrot.slane %v1543_v44, %v4534_v7 }
  0x61   : > { %7303 = vst [vmem:[#allocation43_spill] sm:$0xff] %v4815_v41  ;;  %v4165_v39 = vld.sshfl [vmem:[%s4522_s27 + $0x150] sm:$0xff pattern:$0x75316420]  ;;  %7304 = vst [vmem:[#allocation44_spill] sm:$0xff] %v4823_v22  ;;  %v1611_v30 = vcombine.low %v4163_v28, %v4164_v38  ;;  %v4857_v29 = vrot.slane %v1545_v43, %v4534_v7  ;;  %v1612_v53 = vcombine.high %v4163_v28, %v4164_v38 }
  0x62   : > { %v4166_v23 = vld.sshfl [vmem:[%s4522_s27 + $0x158] sm:$0xff pattern:$0x75316420]  ;;  %v4167_v2 = vld.sshfl [vmem:[%s4522_s27 + $0x160] sm:$0xff pattern:$0x75316420]  ;;  %v4863_v57 = vrot.slane %v1544_v47, %v4534_v7  ;;  %v4875_v25 = vrot.slane %v1546_v52, %v4534_v7  ;;  %v7405_v10 = vcombine.low %v4741_v58, %v4747_v48 }
  0x63   : > { %v4168_v46 = vld.sshfl [vmem:[%s4522_s27 + $0x168] sm:$0xff pattern:$0x75316420]  ;;  %7305 = vst [vmem:[#allocation45_spill] sm:$0xff] %v4838_v31  ;;  %7306 = vst [vmem:[#allocation46_spill] sm:$0xff] %v4841_v20  ;;  %v1613_v41 = vcombine.low %v4165_v39, %v4166_v23  ;;  %v1614_v35 = vcombine.high %v4165_v39, %v4166_v23  ;;  %v4878_v39 = vrot.slane %v1611_v30, %v4534_v7 }
  0x64   : > { %v4169_v37 = vld.sshfl [vmem:[%s4522_s27 + $0x170] sm:$0xff pattern:$0x75316420]  ;;  %v4170_v42 = vld.sshfl [vmem:[%s4522_s27 + $0x178] sm:$0xff pattern:$0x75316420]  ;;  %v1679_v47 = vcombine.low %v4167_v2, %v4168_v46  ;;  %v1680_v59 = vcombine.high %v4167_v2, %v4168_v46  ;;  %v4887_v20 = vrot.slane %v1612_v53, %v4534_v7 }
  0x65   : > { %7307 = vst [vmem:[#allocation47_spill] sm:$0xff] %v4848_v32  ;;  %7308 = vst [vmem:[#allocation48_spill] sm:$0xff] %v4851_v33  ;;  %v4171_v51 = vld.sshfl [vmem:[%s4522_s27 + $0x180] sm:$0xff pattern:$0x75316420]  ;;  %v4881_v38 = vrot.slane %v1613_v41, %v4534_v7  ;;  %v4890_v52 = vrot.slane %v1614_v35, %v4534_v7  ;;  %v1681_v41 = vcombine.low %v4169_v37, %v4170_v42 }
  0x66   : > { %7309 = vst [vmem:[#allocation49_spill] sm:$0xff] %v4854_v21  ;;  %7310 = vst [vmem:[#allocation50_spill] sm:$0xff] %v4857_v29  ;;  %v4172_v56 = vld.sshfl [vmem:[%s4522_s27 + $0x188] sm:$0xff pattern:$0x75316420]  ;;  %v1682_v53 = vcombine.high %v4169_v37, %v4170_v42  ;;  %v4908_v32 = vrot.slane %v1679_v47, %v4534_v7  ;;  %v4911_v2 = vrot.slane %v1680_v59, %v4534_v7 }
  0x67   : > { %7311 = vst [vmem:[#allocation51_spill] sm:$0xff] %v4863_v57  ;;  %v4173_v34 = vld.sshfl [vmem:[%s4522_s27 + $0x190] sm:$0xff pattern:$0x75316420]  ;;  %7312 = vst [vmem:[#allocation52_spill] sm:$0xff] %v4875_v25  ;;  %v4918_v42 = vrot.slane %v1681_v41, %v4534_v7  ;;  %v1747_v35 = vcombine.low %v4171_v51, %v4172_v56  ;;  %v1748_v29 = vcombine.high %v4171_v51, %v4172_v56 }
  0x68   : > { %v4174_v44 = vld.sshfl [vmem:[%s4522_s27 + $0x198] sm:$0xff pattern:$0x75316420]  ;;  %7313 = vst [vmem:[#allocation53_spill] sm:$0xff] %v4878_v39  ;;  %7314 = vst [vmem:[#allocation54_spill] sm:$0xff] %v4881_v38  ;;  %v4924_v38 = vrot.slane %v1682_v53, %v4534_v7 }
  0x69   : > { %v4175_v43 = vld.sshfl [vmem:[%s4522_s27 + $0x1a0] sm:$0xff pattern:$0x75316420]  ;;  %7315 = vst [vmem:[#allocation55_spill] sm:$0xff] %v4887_v20  ;;  %7316 = vst [vmem:[#allocation56_spill] sm:$0xff] %v4890_v52  ;;  %v1749_v57 = vcombine.low %v4173_v34, %v4174_v44  ;;  %v1750_v21 = vcombine.high %v4173_v34, %v4174_v44  ;;  %v4936_v34 = vrot.slane %v1747_v35, %v4534_v7 }
  0x6a   : > { %v4176_v30 = vld.sshfl [vmem:[%s4522_s27 + $0x1a8] sm:$0xff pattern:$0x75316420]  ;;  %v4177_v23 = vld.sshfl [vmem:[%s4522_s27 + $0x1b0] sm:$0xff pattern:$0x75316420]  ;;  %v4942_v53 = vrot.slane %v1748_v29, %v4534_v7 }
  0x6b   : > { %v4178_v33 = vld.sshfl [vmem:[%s4522_s27 + $0x1b8] sm:$0xff pattern:$0x75316420]  ;;  %v4179_v28 = vld.sshfl [vmem:[%s4522_s27 + $0x1c0] sm:$0xff pattern:$0x75316420]  ;;  %v1815_v55 = vcombine.low %v4175_v43, %v4176_v30  ;;  %v1816_v37 = vcombine.high %v4175_v43, %v4176_v30  ;;  %v4939_v44 = vrot.slane %v1749_v57, %v4534_v7 }
  0x6c   : > { %v4180_v31 = vld.sshfl [vmem:[%s4522_s27 + $0x1c8] sm:$0xff pattern:$0x75316420]  ;;  %7317 = vst [vmem:[#allocation57_spill] sm:$0xff] %v4908_v32  ;;  %7318 = vst [vmem:[#allocation58_spill] sm:$0xff] %v4911_v2  ;;  %v1817_v41 = vcombine.low %v4177_v23, %v4178_v33  ;;  %v1818_v19 = vcombine.high %v4177_v23, %v4178_v33  ;;  %v4945_v33 = vrot.slane %v1750_v21, %v4534_v7 }
  0x6d   : > { %v4181_v46 = vld.sshfl [vmem:[%s4522_s27 + $0x1d0] sm:$0xff pattern:$0x75316420]  ;;  %v4182_v25 = vld.sshfl [vmem:[%s4522_s27 + $0x1d8] sm:$0xff pattern:$0x75316420]  ;;  %v1883_v43 = vcombine.low %v4179_v28, %v4180_v31  ;;  %v4948_v30 = vrot.slane %v1815_v55, %v4534_v7  ;;  %v4951_v56 = vrot.slane %v1816_v37, %v4534_v7  ;;  %v1884_v32 = vcombine.high %v4179_v28, %v4180_v31 }
  0x6e   : > { %7319 = vst [vmem:[#allocation59_spill] sm:$0xff] %v4918_v42  ;;  %v4183_v22 = vld.sshfl [vmem:[%s4522_s27 + $0x1e0] sm:$0xff pattern:$0x75316420]  ;;  %7320 = vst [vmem:[#allocation60_spill] sm:$0xff] %v4924_v38  ;;  %v1885_v23 = vcombine.low %v4181_v46, %v4182_v25  ;;  %v4954_v35 = vrot.slane %v1817_v41, %v4534_v7  ;;  %v4957_v57 = vrot.slane %v1818_v19, %v4534_v7 }
  0x6f   : > { %v4184_v59 = vld.sshfl [vmem:[%s4522_s27 + $0x1e8] sm:$0xff pattern:$0x75316420]  ;;  %v4928_v39 = vld.sshfl [vmem:[%s4522_s27 + $0x1f0] sm:$0xff pattern:$0x75316420]  ;;  %v1886_v21 = vcombine.high %v4181_v46, %v4182_v25  ;;  %v4974_v52 = vrot.slane %v1883_v43, %v4534_v7 }
  0x70   : > { %v4186_v36 = vld.sshfl [vmem:[%s4522_s27 + $0x1f8] sm:$0xff pattern:$0x75316420]  ;;  %7321 = vst [vmem:[#allocation61_spill] sm:$0xff] %v4936_v34  ;;  %7322 = vst [vmem:[#allocation62_spill] sm:$0xff] %v4939_v44  ;;  %v4977_v29 = vrot.slane %v1885_v23, %v4534_v7  ;;  %v1951_v55 = vcombine.low %v4183_v22, %v4184_v59  ;;  %v1952_v37 = vcombine.high %v4183_v22, %v4184_v59 }
  0x71   : > { %7323 = vst [vmem:[#allocation63_spill] sm:$0xff] %v4942_v53  ;;  %7324 = vst [vmem:[#allocation64_spill] sm:$0xff] %v4945_v33  ;;  %v4187_v51 = vld.sshfl [vmem:[%s4522_s27 + $0x200] sm:$0xff pattern:$0x75316420]  ;;  %v1953_v44 = vcombine.low %v4928_v39, %v4186_v36  ;;  %v4995_v23 = vrot.slane %v1884_v32, %v4534_v7  ;;  %v4998_v38 = vrot.slane %v1886_v21, %v4534_v7 }
  0x72   : > { %7325 = vst [vmem:[#allocation65_spill] sm:$0xff] %v4948_v30  ;;  %7326 = vst [vmem:[#allocation66_spill] sm:$0xff] %v4951_v56  ;;  %v4188_v47 = vld.sshfl [vmem:[%s4522_s27 + $0x208] sm:$0xff pattern:$0x75316420]  ;;  %v1954_v31 = vcombine.high %v4928_v39, %v4186_v36  ;;  %v5009_v32 = vrot.slane %v1952_v37, %v4534_v7 }
  0x73   : > { %7327 = vst [vmem:[#allocation67_spill] sm:$0xff] %v4954_v35  ;;  %7328 = vst [vmem:[#allocation68_spill] sm:$0xff] %v4957_v57  ;;  %v4189_v41 = vld.sshfl [vmem:[%s4522_s27 + $0x210] sm:$0xff pattern:$0x75316420]  ;;  %v5006_v35 = vrot.slane %v1951_v55, %v4534_v7  ;;  %v5012_v21 = vrot.slane %v1953_v44, %v4534_v7  ;;  %v2019_v39 = vcombine.low %v4187_v51, %v4188_v47 }
  0x74   : > { %v4190_v19 = vld.sshfl [vmem:[%s4522_s27 + $0x218] sm:$0xff pattern:$0x75316420]  ;;  %7329 = vst [vmem:[#allocation69_spill] sm:$0xff] %v4974_v52  ;;  %7330 = vst [vmem:[#allocation70_spill] sm:$0xff] %v4977_v29  ;;  %v2020_v56 = vcombine.high %v4187_v51, %v4188_v47  ;;  %v5024_v53 = vrot.slane %v1954_v31, %v4534_v7 }
  0x75   : > { %v4191_v34 = vld.sshfl [vmem:[%s4522_s27 + $0x220] sm:$0xff pattern:$0x75316420]  ;;  %v4192_v46 = vld.sshfl [vmem:[%s4522_s27 + $0x228] sm:$0xff pattern:$0x75316420]  ;;  %v2021_v30 = vcombine.low %v4189_v41, %v4190_v19  ;;  %v2022_v55 = vcombine.high %v4189_v41, %v4190_v19  ;;  %v5036_v19 = vrot.slane %v2019_v39, %v4534_v7 }
  0x76   : > { %v4193_v43 = vld.sshfl [vmem:[%s4522_s27 + $0x230] sm:$0xff pattern:$0x75316420]  ;;  %v4194_v22 = vld.sshfl [vmem:[%s4522_s27 + $0x238] sm:$0xff pattern:$0x75316420]  ;;  %v2087_v51 = vcombine.low %v4191_v34, %v4192_v46  ;;  %v5039_v37 = vrot.slane %v2020_v56, %v4534_v7  ;;  %v2088_v25 = vcombine.high %v4191_v34, %v4192_v46 }
  0x77   : > { %7331 = vst [vmem:[#allocation71_spill] sm:$0xff] %v4995_v23  ;;  %7332 = vst [vmem:[#allocation72_spill] sm:$0xff] %v4998_v38  ;;  %v4195_v28 = vld.sshfl [vmem:[%s4522_s27 + $0x240] sm:$0xff pattern:$0x75316420]  ;;  %v2089_v41 = vcombine.low %v4193_v43, %v4194_v22  ;;  %v5042_v31 = vrot.slane %v2021_v30, %v4534_v7  ;;  %v5045_v36 = vrot.slane %v2022_v55, %v4534_v7 }
  0x78   : > { %v4196_v42 = vld.sshfl [vmem:[%s4522_s27 + $0x248] sm:$0xff pattern:$0x75316420]  ;;  %7333 = vst [vmem:[#allocation73_spill] sm:$0xff] %v5006_v35  ;;  %7334 = vst [vmem:[#allocation74_spill] sm:$0xff] %v5009_v32  ;;  %v2090_v38 = vcombine.high %v4193_v43, %v4194_v22  ;;  %v5050_v35 = vrot.slane %v2087_v51, %v4534_v7  ;;  %v5061_v43 = vrot.slane %v2088_v25, %v4534_v7 }
  0x79   : > { %7335 = vst [vmem:[#allocation75_spill] sm:$0xff] %v5012_v21  ;;  %v4197_v59 = vld.sshfl [vmem:[%s4522_s27 + $0x250] sm:$0xff pattern:$0x75316420]  ;;  %7336 = vst [vmem:[#allocation76_spill] sm:$0xff] %v5024_v53  ;;  %v2155_v47 = vcombine.low %v4195_v28, %v4196_v42  ;;  %v5053_v56 = vrot.slane %v2089_v41, %v4534_v7  ;;  %v2156_v30 = vcombine.high %v4195_v28, %v4196_v42 }
  0x7a   : > { %v4198_v57 = vld.sshfl [vmem:[%s4522_s27 + $0x258] sm:$0xff pattern:$0x75316420]  ;;  %v4199_v33 = vld.sshfl [vmem:[%s4522_s27 + $0x260] sm:$0xff pattern:$0x75316420]  ;;  %v5071_v34 = vrot.slane %v2090_v38, %v4534_v7 }
  0x7b   : > { %v4200_v44 = vld.sshfl [vmem:[%s4522_s27 + $0x268] sm:$0xff pattern:$0x75316420]  ;;  %v5028_v2 = vld.sshfl [vmem:[%s4522_s27 + $0x270] sm:$0xff pattern:$0x75316420]  ;;  %v2157_v21 = vcombine.low %v4197_v59, %v4198_v57  ;;  %v2158_v22 = vcombine.high %v4197_v59, %v4198_v57  ;;  %v5074_v46 = vrot.slane %v2155_v47, %v4534_v7  ;;  %v5086_v47 = vrot.slane %v2156_v30, %v4534_v7 }
  0x7c   : > { %v4202_v20 = vld.sshfl [vmem:[%s4522_s27 + $0x278] sm:$0xff pattern:$0x75316420]  ;;  %7337 = vst [vmem:[#allocation77_spill] sm:$0xff] %v5036_v19  ;;  %7338 = vst [vmem:[#allocation78_spill] sm:$0xff] %v5039_v37  ;;  %v2223_v25 = vcombine.low %v4199_v33, %v4200_v44  ;;  %v2224_v59 = vcombine.high %v4199_v33, %v4200_v44 }
  0x7d   : > { %7339 = vst [vmem:[#allocation79_spill] sm:$0xff] %v5042_v31  ;;  %7340 = vst [vmem:[#allocation80_spill] sm:$0xff] %v5045_v36  ;;  %v4203_v23 = vld.sshfl [vmem:[%s4522_s27 + $0x280] sm:$0xff pattern:$0x75316420]  ;;  %v5077_v57 = vrot.slane %v2157_v21, %v4534_v7  ;;  %v2225_v39 = vcombine.low %v5028_v2, %v4202_v20  ;;  %v5092_v19 = vrot.slane %v2158_v22, %v4534_v7 }
  0x7e   : > { %7341 = vst [vmem:[#allocation81_spill] sm:$0xff] %v5050_v35  ;;  %7342 = vst [vmem:[#allocation82_spill] sm:$0xff] %v5053_v56  ;;  %v4204_v55 = vld.sshfl [vmem:[%s4522_s27 + $0x288] sm:$0xff pattern:$0x75316420]  ;;  %v2226_v30 = vcombine.high %v5028_v2, %v4202_v20  ;;  %v5106_v22 = vrot.slane %v2223_v25, %v4534_v7  ;;  %v5109_v33 = vrot.slane %v2224_v59, %v4534_v7 }
  0x7f   : > { %7343 = vst [vmem:[#allocation83_spill] sm:$0xff] %v5061_v43  ;;  %v4205_v51 = vld.sshfl [vmem:[%s4522_s27 + $0x290] sm:$0xff pattern:$0x75316420]  ;;  %7344 = vst [vmem:[#allocation84_spill] sm:$0xff] %v5071_v34  ;;  %v5112_v44 = vrot.slane %v2225_v39, %v4534_v7  ;;  %v2291_v37 = vcombine.low %v4203_v23, %v4204_v55  ;;  %v2292_v56 = vcombine.high %v4203_v23, %v4204_v55 }
  0x80   : > { %v4206_v41 = vld.sshfl [vmem:[%s4522_s27 + $0x298] sm:$0xff pattern:$0x75316420]  ;;  %7345 = vst [vmem:[#allocation85_spill] sm:$0xff] %v5074_v46  ;;  %7346 = vst [vmem:[#allocation86_spill] sm:$0xff] %v5077_v57  ;;  %v5124_v32 = vrot.slane %v2226_v30, %v4534_v7 }
  0x81   : > { %v4207_v53 = vld.sshfl [vmem:[%s4522_s27 + $0x2a0] sm:$0xff pattern:$0x75316420]  ;;  %7347 = vst [vmem:[#allocation87_spill] sm:$0xff] %v5086_v47  ;;  %7348 = vst [vmem:[#allocation88_spill] sm:$0xff] %v5092_v19  ;;  %v2293_v43 = vcombine.low %v4205_v51, %v4206_v41  ;;  %v2294_v25 = vcombine.high %v4205_v51, %v4206_v41  ;;  %v5136_v51 = vrot.slane %v2291_v37, %v4534_v7 }
  0x82   : > { %v4208_v21 = vld.sshfl [vmem:[%s4522_s27 + $0x2a8] sm:$0xff pattern:$0x75316420]  ;;  %v4209_v28 = vld.sshfl [vmem:[%s4522_s27 + $0x2b0] sm:$0xff pattern:$0x75316420]  ;;  %v5142_v19 = vrot.slane %v2292_v56, %v4534_v7 }
  0x83   : > { %v4210_v31 = vld.sshfl [vmem:[%s4522_s27 + $0x2b8] sm:$0xff pattern:$0x75316420]  ;;  %v4211_v42 = vld.sshfl [vmem:[%s4522_s27 + $0x2c0] sm:$0xff pattern:$0x75316420]  ;;  %v2359_v23 = vcombine.low %v4207_v53, %v4208_v21  ;;  %v5139_v41 = vrot.slane %v2293_v43, %v4534_v7  ;;  %v2360_v30 = vcombine.high %v4207_v53, %v4208_v21  ;;  %v5145_v20 = vrot.slane %v2294_v25, %v4534_v7 }
  0x84   : > { %v4212_v36 = vld.sshfl [vmem:[%s4522_s27 + $0x2c8] sm:$0xff pattern:$0x75316420]  ;;  %7349 = vst [vmem:[#allocation89_spill] sm:$0xff] %v5106_v22  ;;  %7350 = vst [vmem:[#allocation90_spill] sm:$0xff] %v5109_v33  ;;  %v2361_v55 = vcombine.low %v4209_v28, %v4210_v31  ;;  %v2362_v59 = vcombine.high %v4209_v28, %v4210_v31 }
  0x85   : > { %7351 = vst [vmem:[#allocation91_spill] sm:$0xff] %v5112_v44  ;;  %v4213_v38 = vld.sshfl [vmem:[%s4522_s27 + $0x2d0] sm:$0xff pattern:$0x75316420]  ;;  %7352 = vst [vmem:[#allocation92_spill] sm:$0xff] %v5124_v32  ;;  %v2427_v2 = vcombine.low %v4211_v42, %v4212_v36  ;;  %v5152_v43 = vrot.slane %v2359_v23, %v4534_v7  ;;  %v5164_v25 = vrot.slane %v2360_v30, %v4534_v7 }
  0x86   : > { %v4214_v34 = vld.sshfl [vmem:[%s4522_s27 + $0x2d8] sm:$0xff pattern:$0x75316420]  ;;  %v4215_v35 = vld.sshfl [vmem:[%s4522_s27 + $0x2e0] sm:$0xff pattern:$0x75316420]  ;;  %v5155_v53 = vrot.slane %v2361_v55, %v4534_v7  ;;  %v5167_v37 = vrot.slane %v2362_v59, %v4534_v7  ;;  %v2428_v32 = vcombine.high %v4211_v42, %v4212_v36 }
  0x87   : > { %v4216_v39 = vld.sshfl [vmem:[%s4522_s27 + $0x2e8] sm:$0xff pattern:$0x75316420]  ;;  %v5128_v29 = vld.sshfl [vmem:[%s4522_s27 + $0x2f0] sm:$0xff pattern:$0x75316420]  ;;  %v2429_v44 = vcombine.low %v4213_v38, %v4214_v34  ;;  %v2430_v28 = vcombine.high %v4213_v38, %v4214_v34  ;;  %v5174_v33 = vrot.slane %v2427_v2, %v4534_v7 }
  0x88   : > { %v4218_v52 = vld.sshfl [vmem:[%s4522_s27 + $0x2f8] sm:$0xff pattern:$0x75316420]  ;;  %7353 = vst [vmem:[#allocation93_spill] sm:$0xff] %v5136_v51  ;;  %7354 = vst [vmem:[#allocation94_spill] sm:$0xff] %v5139_v41  ;;  %v2495_v30 = vcombine.low %v4215_v35, %v4216_v39  ;;  %v2496_v41 = vcombine.high %v4215_v35, %v4216_v39  ;;  %v5195_v39 = vrot.slane %v2428_v32, %v4534_v7 }
  0x89   : > { %7355 = vst [vmem:[#allocation95_spill] sm:$0xff] %v5142_v19  ;;  %7356 = vst [vmem:[#allocation96_spill] sm:$0xff] %v5145_v20  ;;  %v4219_v31 = vld.sshfl [vmem:[%s4522_s27 + $0x300] sm:$0xff pattern:$0x75316420]  ;;  %v5177_v21 = vrot.slane %v2429_v44, %v4534_v7  ;;  %v2497_v59 = vcombine.low %v5128_v29, %v4218_v52  ;;  %v5198_v47 = vrot.slane %v2430_v28, %v4534_v7 }
  0x8a   : > { %7357 = vst [vmem:[#allocation97_spill] sm:$0xff] %v5152_v43  ;;  %7358 = vst [vmem:[#allocation98_spill] sm:$0xff] %v5155_v53  ;;  %v4220_v56 = vld.sshfl [vmem:[%s4522_s27 + $0x308] sm:$0xff pattern:$0x75316420]  ;;  %v2498_v51 = vcombine.high %v5128_v29, %v4218_v52  ;;  %v5205_v38 = vrot.slane %v2495_v30, %v4534_v7  ;;  %v5208_v2 = vrot.slane %v2496_v41, %v4534_v7 }
  0x8b   : > { %7359 = vst [vmem:[#allocation99_spill] sm:$0xff] %v5164_v25  ;;  %7360 = vst [vmem:[#allocation100_spill] sm:$0xff] %v5167_v37  ;;  %v4221_v23 = vld.sshfl [vmem:[%s4522_s27 + $0x310] sm:$0xff pattern:$0x75316420]  ;;  %v5211_v32 = vrot.slane %v2497_v59, %v4534_v7  ;;  %v2563_v52 = vcombine.low %v4219_v31, %v4220_v56  ;;  %v2564_v29 = vcombine.high %v4219_v31, %v4220_v56 }
  0x8c   : > { %v4222_v55 = vld.sshfl [vmem:[%s4522_s27 + $0x318] sm:$0xff pattern:$0x75316420]  ;;  %7361 = vst [vmem:[#allocation101_spill] sm:$0xff] %v5174_v33  ;;  %7362 = vst [vmem:[#allocation102_spill] sm:$0xff] %v5177_v21  ;;  %v5224_v59 = vrot.slane %v2498_v51, %v4534_v7 }
  0x8d   : > { %v4223_v36 = vld.sshfl [vmem:[%s4522_s27 + $0x320] sm:$0xff pattern:$0x75316420]  ;;  %v4224_v34 = vld.sshfl [vmem:[%s4522_s27 + $0x328] sm:$0xff pattern:$0x75316420]  ;;  %v2565_v53 = vcombine.low %v4221_v23, %v4222_v55  ;;  %v2566_v43 = vcombine.high %v4221_v23, %v4222_v55  ;;  %v5232_v56 = vrot.slane %v2563_v52, %v4534_v7  ;;  %v5235_v23 = vrot.slane %v2564_v29, %v4534_v7 }
  0x8e   : > { %v4225_v35 = vld.sshfl [vmem:[%s4522_s27 + $0x330] sm:$0xff pattern:$0x75316420]  ;;  %v4226_v44 = vld.sshfl [vmem:[%s4522_s27 + $0x338] sm:$0xff pattern:$0x75316420]  ;;  %v2631_v55 = vcombine.low %v4223_v36, %v4224_v34  ;;  %v2632_v41 = vcombine.high %v4223_v36, %v4224_v34 }
  0x8f   : > { %7363 = vst [vmem:[#allocation103_spill] sm:$0xff] %v5195_v39  ;;  %7364 = vst [vmem:[#allocation104_spill] sm:$0xff] %v5198_v47  ;;  %v4227_v22 = vld.sshfl [vmem:[%s4522_s27 + $0x340] sm:$0xff pattern:$0x75316420]  ;;  %v5238_v30 = vrot.slane %v2565_v53, %v4534_v7  ;;  %v5241_v51 = vrot.slane %v2566_v43, %v4534_v7  ;;  %v2633_v20 = vcombine.low %v4225_v35, %v4226_v44 }
  0x90   : > { %7365 = vst [vmem:[#allocation105_spill] sm:$0xff] %v5205_v38  ;;  %7366 = vst [vmem:[#allocation106_spill] sm:$0xff] %v5208_v2  ;;  %v4228_v28 = vld.sshfl [vmem:[%s4522_s27 + $0x348] sm:$0xff pattern:$0x75316420]  ;;  %v2634_v47 = vcombine.high %v4225_v35, %v4226_v44  ;;  %v5252_v34 = vrot.slane %v2631_v55, %v4534_v7  ;;  %v5255_v35 = vrot.slane %v2632_v41, %v4534_v7 }
  0x91   : > { %7367 = vst [vmem:[#allocation107_spill] sm:$0xff] %v5211_v32  ;;  %v4229_v37 = vld.sshfl [vmem:[%s4522_s27 + $0x350] sm:$0xff pattern:$0x75316420]  ;;  %7368 = vst [vmem:[#allocation108_spill] sm:$0xff] %v5224_v59  ;;  %v2699_v52 = vcombine.low %v4227_v22, %v4228_v28  ;;  %v2700_v21 = vcombine.high %v4227_v22, %v4228_v28  ;;  %v5258_v44 = vrot.slane %v2633_v20, %v4534_v7 }
  0x92   : > { %v4230_v25 = vld.sshfl [vmem:[%s4522_s27 + $0x358] sm:$0xff pattern:$0x75316420]  ;;  %v4231_v42 = vld.sshfl [vmem:[%s4522_s27 + $0x360] sm:$0xff pattern:$0x75316420]  ;;  %v5269_v55 = vrot.slane %v2634_v47, %v4534_v7 }
  0x93   : > { %v4232_v19 = vld.sshfl [vmem:[%s4522_s27 + $0x368] sm:$0xff pattern:$0x75316420]  ;;  %v4233_v57 = vld.sshfl [vmem:[%s4522_s27 + $0x370] sm:$0xff pattern:$0x75316420]  ;;  %v2701_v39 = vcombine.low %v4229_v37, %v4230_v25  ;;  %v2702_v43 = vcombine.high %v4229_v37, %v4230_v25  ;;  %v5272_v20 = vrot.slane %v2699_v52, %v4534_v7 }
  0x94   : > { %v4234_v46 = vld.sshfl [vmem:[%s4522_s27 + $0x378] sm:$0xff pattern:$0x75316420]  ;;  %7369 = vst [vmem:[#allocation109_spill] sm:$0xff] %v5232_v56  ;;  %7370 = vst [vmem:[#allocation110_spill] sm:$0xff] %v5235_v23  ;;  %v2767_v37 = vcombine.low %v4231_v42, %v4232_v19  ;;  %v2768_v53 = vcombine.high %v4231_v42, %v4232_v19 }
  0x95   : > { %7371 = vst [vmem:[#allocation111_spill] sm:$0xff] %v5238_v30  ;;  %7372 = vst [vmem:[#allocation112_spill] sm:$0xff] %v5241_v51  ;;  %v4235_v31 = vld.sshfl [vmem:[%s4522_s27 + $0x380] sm:$0xff pattern:$0x75316420]  ;;  %v2769_v25 = vcombine.low %v4233_v57, %v4234_v46  ;;  %v5275_v36 = vrot.slane %v2701_v39, %v4534_v7  ;;  %v5280_v30 = vrot.slane %v2700_v21, %v4534_v7 }
  0x96   : > { %7373 = vst [vmem:[#allocation113_spill] sm:$0xff] %v5252_v34  ;;  %7374 = vst [vmem:[#allocation114_spill] sm:$0xff] %v5255_v35  ;;  %v4236_v29 = vld.sshfl [vmem:[%s4522_s27 + $0x388] sm:$0xff pattern:$0x75316420]  ;;  %v5283_v56 = vrot.slane %v2702_v43, %v4534_v7  ;;  %v2770_v47 = vcombine.high %v4233_v57, %v4234_v46  ;;  %v5294_v21 = vrot.slane %v2767_v37, %v4534_v7 }
  0x97   : > { %7375 = vst [vmem:[#allocation115_spill] sm:$0xff] %v5258_v44  ;;  %v4237_v28 = vld.sshfl [vmem:[%s4522_s27 + $0x390] sm:$0xff pattern:$0x75316420]  ;;  %7376 = vst [vmem:[#allocation116_spill] sm:$0xff] %v5269_v55  ;;  %v5297_v43 = vrot.slane %v2769_v25, %v4534_v7  ;;  %v5307_v52 = vrot.slane %v2768_v53, %v4534_v7  ;;  %v2835_v35 = vcombine.low %v4235_v31, %v4236_v29 }
  0x98   : > { %v4238_v41 = vld.sshfl [vmem:[%s4522_s27 + $0x398] sm:$0xff pattern:$0x75316420]  ;;  %7377 = vst [vmem:[#allocation117_spill] sm:$0xff] %v5280_v30  ;;  %7378 = vst [vmem:[#allocation118_spill] sm:$0xff] %v5283_v56  ;;  %v5319_v55 = vrot.slane %v2770_v47, %v4534_v7  ;;  %v2836_v23 = vcombine.high %v4235_v31, %v4236_v29 }
  0x99   : > { %v4239_v59 = vld.sshfl [vmem:[%s4522_s27 + $0x3a0] sm:$0xff pattern:$0x75316420]  ;;  %v4240_v42 = vld.sshfl [vmem:[%s4522_s27 + $0x3a8] sm:$0xff pattern:$0x75316420]  ;;  %v2837_v2 = vcombine.low %v4237_v28, %v4238_v41  ;;  %v2838_v46 = vcombine.high %v4237_v28, %v4238_v41  ;;  %v5340_v30 = vrot.slane %v2835_v35, %v4534_v7 }
  0x9a   : > { %v4241_v39 = vld.sshfl [vmem:[%s4522_s27 + $0x3b0] sm:$0xff pattern:$0x75316420]  ;;  %v4242_v22 = vld.sshfl [vmem:[%s4522_s27 + $0x3b8] sm:$0xff pattern:$0x75316420]  ;;  %v2903_v53 = vcombine.low %v4239_v59, %v4240_v42  ;;  %v2904_v56 = vcombine.high %v4239_v59, %v4240_v42  ;;  %v5346_v28 = vrot.slane %v2836_v23, %v4534_v7 }
  0x9b   : > { %7379 = vst [vmem:[#allocation119_spill] sm:$0xff] %v5297_v43  ;;  %v4243_v51 = vld.sshfl [vmem:[%s4522_s27 + $0x3c0] sm:$0xff pattern:$0x75316420]  ;;  %v2905_v31 = vcombine.low %v4241_v39, %v4242_v22  ;;  %v2906_v29 = vcombine.high %v4241_v39, %v4242_v22  ;;  %v5343_v34 = vrot.slane %v2837_v2, %v4534_v7  ;;  %v5349_v59 = vrot.slane %v2838_v46, %v4534_v7 }
  0x9c   : > { %v4244_v37 = vld.sshfl [vmem:[%s4522_s27 + $0x3c8] sm:$0xff pattern:$0x75316420]  ;;  %v4245_v44 = vld.sshfl [vmem:[%s4522_s27 + $0x3d0] sm:$0xff pattern:$0x75316420]  ;;  %v5354_v42 = vrot.slane %v2903_v53, %v4534_v7  ;;  %v5357_v35 = vrot.slane %v2904_v56, %v4534_v7 }
  0x9d   : > { %v4246_v25 = vld.sshfl [vmem:[%s4522_s27 + $0x3d8] sm:$0xff pattern:$0x75316420]  ;;  %v4247_v19 = vld.sshfl [vmem:[%s4522_s27 + $0x3e0] sm:$0xff pattern:$0x75316420]  ;;  %v2971_v47 = vcombine.low %v4243_v51, %v4244_v37  ;;  %v2972_v22 = vcombine.high %v4243_v51, %v4244_v37  ;;  %v5360_v2 = vrot.slane %v2905_v31, %v4534_v7  ;;  %v5363_v23 = vrot.slane %v2906_v29, %v4534_v7 }
  0x9e   : > { %v4248_v32 = vld.sshfl [vmem:[%s4522_s27 + $0x3e8] sm:$0xff pattern:$0x75316420]  ;;  %v4249_v38 = vld.sshfl [vmem:[%s4522_s27 + $0x3f0] sm:$0xff pattern:$0x75316420]  ;;  %v2973_v43 = vcombine.low %v4245_v44, %v4246_v25  ;;  %v2974_v41 = vcombine.high %v4245_v44, %v4246_v25  ;;  %v7380_v31 = vcombine.low %v4638_v54, %v4643_v61 }
  0x9f   : > { %v4250_v33 = vld.sshfl [vmem:[%s4522_s27 + $0x3f8] sm:$0xff pattern:$0x75316420]  ;;  %v3039_v39 = vcombine.low %v4247_v19, %v4248_v32  ;;  %v3040_v46 = vcombine.high %v4247_v19, %v4248_v32  ;;  %v5372_v37 = vrot.slane %v2971_v47, %v4534_v7  ;;  %v7385_v47 = vcombine.low %v4663_v6, %v4669_v13 }
  0xa0   : > { %v3041_v57 = vcombine.low %v4249_v38, %v4250_v33  ;;  %v3042_v51 = vcombine.high %v4249_v38, %v4250_v33  ;;  %v5375_v25 = vrot.slane %v2973_v43, %v4534_v7  ;;  %v5382_v38 = vrot.slane %v2972_v22, %v4534_v7  ;;  %v7412_v33 = vld [vmem:[#allocation33_spill] sm:$0xff]  ;;  %v7413_v56 = vld [vmem:[#allocation34_spill] sm:$0xff] }
  0xa1   : > { %v5385_v19 = vrot.slane %v2974_v41, %v4534_v7  ;;  %v5398_v29 = vrot.slane %v3039_v39, %v4534_v7  ;;  %v5401_v22 = vrot.slane %v3040_v46, %v4534_v7  ;;  %v5419_v39 = vsel %vm547_vm0, %v7380_v31, 0.0 }
  0xa2   : > { %v5404_v41 = vrot.slane %v3041_v57, %v4534_v7  ;;  %v5407_v53 = vrot.slane %v3042_v51, %v4534_v7  ;;  %v7381_v57 = vcombine.low %v4646_v62, %v4649_v63  ;;  %v7382_v46 = vcombine.high %v4638_v54, %v4643_v61 }
  0xa3   : > { %v7384_v61 = vcombine.low %v4660_v5, %v4666_v12  ;;  %v5467_v3 = vsel %vm548_vm1, %v7385_v47, 0.0  ;;  %v7393_v31 = vcombine.high %v4700_v1, %v4703_v0  ;;  %v7410_v43 = vcombine.high %v4741_v58, %v4747_v48  ;;  %v7416_v58 = vld [vmem:[#allocation35_spill] sm:$0xff]  ;;  %v7417_v48 = vld [vmem:[#allocation36_spill] sm:$0xff] }
  0xa4   : > { %v5427_v7 = vsel %vm547_vm0, %v7381_v57, 0.0  ;;  %v5435_v51 = vsel %vm547_vm0, %v7382_v46, 0.0  ;;  %v7383_v57 = vcombine.high %v4646_v62, %v4649_v63  ;;  %v7386_v62 = vcombine.high %v4660_v5, %v4666_v12 }
  0xa5   : > { %v5459_v46 = vsel %vm548_vm1, %v7384_v61, 0.0  ;;  %v7388_v12 = vcombine.low %v4692_v45, %v4695_v50  ;;  %v5525_v8 = vsel %vm549_vm2, %v7393_v31, 0.0  ;;  %v7418_v44 = vcombine.low %v7416_v58, %v7417_v48 }
  0xa6   : > { %v5449_v54 = vsel %vm547_vm0, %v7383_v57, 0.0  ;;  %v5475_v63 = vsel %vm548_vm1, %v7386_v62, 0.0  ;;  %v7387_v57 = vcombine.high %v4663_v6, %v4669_v13  ;;  %v7389_v13 = vcombine.low %v4700_v1, %v4703_v0  ;;  %7394 = vst [vmem:[#allocation122_spill] sm:$0xff] %v5525_v8 }
  0xa7   : > { %v5497_v6 = vsel %vm549_vm2, %v7388_v12, 0.0  ;;  %v5549_v1 = vsel %vm550_vm3, %v7399_v9, 0.0  ;;  %v3335_v31 = vadd.f32 %v5459_v46, %v5419_v39  ;;  %v7403_v9 = vcombine.low %v4738_v4, %v4744_v60 }
  0xa8   : > { %v5483_v61 = vsel %vm548_vm1, %v7387_v57, 0.0  ;;  %v5509_v62 = vsel %vm549_vm2, %v7389_v13, 0.0  ;;  %v7391_v57 = vcombine.high %v4692_v45, %v4695_v50  ;;  %v7395_v13 = vcombine.low %v4710_v26, %v4716_v49  ;;  %7400 = vst [vmem:[#allocation125_spill] sm:$0xff] %v5549_v1 }
  0xa9   : > { %7390 = vst [vmem:[#allocation120_spill] sm:$0xff] %v5509_v62  ;;  %v7397_v50 = vcombine.low %v4713_v27, %v4730_v40  ;;  %v3366_v26 = vadd.f32 %v5467_v3, %v5427_v7  ;;  %v3397_v49 = vadd.f32 %v5475_v63, %v5435_v51  ;;  %v3336_v47 = vadd.f32 %v3335_v31, %v5497_v6 }
  0xaa   : > { %v5517_v12 = vsel %vm549_vm2, %v7391_v57, 0.0  ;;  %v5533_v45 = vsel %vm550_vm3, %v7395_v13, 0.0  ;;  %v7401_v57 = vcombine.high %v4713_v27, %v4730_v40  ;;  %v5575_v40 = vsel %vm551_vm4, %v7403_v9, 0.0  ;;  %v7409_v9 = vld [vmem:[#allocation11_spill] sm:$0xff] }
  0xab   : > { %7392 = vst [vmem:[#allocation121_spill] sm:$0xff] %v5517_v12  ;;  %7396 = vst [vmem:[#allocation123_spill] sm:$0xff] %v5533_v45  ;;  %v5541_v0 = vsel %vm550_vm3, %v7397_v50, 0.0  ;;  %v3428_v50 = vadd.f32 %v5483_v61, %v5449_v54  ;;  %v5583_v27 = vsel %vm551_vm4, %v7405_v10, 0.0  ;;  %vm557_vm10 = vcmp.lt.s32.totalorder %v7409_v9, %v4578_v24 }
  0xac   : > { %7398 = vst [vmem:[#allocation124_spill] sm:$0xff] %v5541_v0  ;;  %v5561_v13 = vsel %vm550_vm3, %v7401_v57, 0.0  ;;  %7404 = vst [vmem:[#allocation127_spill] sm:$0xff] %v5575_v40  ;;  %v7407_v57 = vcombine.high %v4738_v4, %v4744_v60  ;;  %v5602_v10 = vsel %vm551_vm4, %v7410_v43, 0.0  ;;  %v3367_v60 = vadd.f32 %v3366_v26, %v5509_v62 }
  0xad   : > { %7402 = vst [vmem:[#allocation126_spill] sm:$0xff] %v5561_v13  ;;  %7406 = vst [vmem:[#allocation128_spill] sm:$0xff] %v5583_v27  ;;  %v3398_v4 = vadd.f32 %v3397_v49, %v5517_v12  ;;  %v7414_v31 = vcombine.low %v7412_v33, %v7413_v56  ;;  %v5621_v11 = vsel %vm552_vm5, %v7418_v44, 0.0  ;;  %v7420_v43 = vcombine.high %v7412_v33, %v7413_v56  ;;  %v7426_v12 = vld [vmem:[#allocation38_spill] sm:$0xff] }
  0xae   : > { %v5591_v5 = vsel %vm551_vm4, %v7407_v57, 0.0  ;;  %7411 = vst [vmem:[#allocation11_spill] sm:$0xff] %v5602_v10  ;;  %v3429_v57 = vadd.f32 %v3428_v50, %v5525_v8  ;;  %7419 = vst [vmem:[#allocation34_spill] sm:$0xff] %v5621_v11  ;;  %v3337_v49 = vadd.f32 %v3336_v47, %v5533_v45  ;;  %v7422_v50 = vld [vmem:[#allocation12_spill] sm:$0xff]  ;;  %v3368_v56 = vadd.f32 %v3367_v60, %v5541_v0  ;;  %v7425_v8 = vld [vmem:[#allocation37_spill] sm:$0xff] }
  0xaf   : > { %7408 = vst [vmem:[#allocation129_spill] sm:$0xff] %v5591_v5  ;;  %v5613_v32 = vsel %vm552_vm5, %v7414_v31, 0.0  ;;  %v5629_v26 = vsel %vm552_vm5, %v7420_v43, 0.0  ;;  %vm558_vm11 = vcmp.lt.s32.totalorder %v7422_v50, %v4578_v24  ;;  %v7423_v31 = vcombine.high %v7416_v58, %v7417_v48  ;;  %v7429_v58 = vld [vmem:[#allocation39_spill] sm:$0xff]  ;;  %v7430_v48 = vld [vmem:[#allocation40_spill] sm:$0xff] }
  0xb0   : > { %7415 = vst [vmem:[#allocation33_spill] sm:$0xff] %v5613_v32  ;;  %7421 = vst [vmem:[#allocation35_spill] sm:$0xff] %v5629_v26  ;;  %v3399_v33 = vadd.f32 %v3398_v4, %v5549_v1  ;;  %v3430_v43 = vadd.f32 %v3429_v57, %v5561_v13  ;;  %v7427_v47 = vcombine.low %v7425_v8, %v7426_v12  ;;  %v7438_v13 = vld [vmem:[#allocation41_spill] sm:$0xff]  ;;  %v7439_v1 = vld [vmem:[#allocation43_spill] sm:$0xff] }
  0xb1   : > { %v5640_v44 = vsel %vm552_vm5, %v7423_v31, 0.0  ;;  %v7431_v62 = vcombine.low %v7429_v58, %v7430_v48  ;;  %v7433_v60 = vcombine.high %v7425_v8, %v7426_v12  ;;  %v3338_v57 = vadd.f32 %v3337_v49, %v5575_v40  ;;  %v7435_v31 = vld [vmem:[#allocation13_spill] sm:$0xff] }
  0xb2   : > { %7424 = vst [vmem:[#allocation36_spill] sm:$0xff] %v5640_v44  ;;  %v5651_v45 = vsel %vm553_vm6, %v7427_v47, 0.0  ;;  %vm559_vm12 = vcmp.lt.s32.totalorder %v7435_v31, %v4578_v24  ;;  %v7436_v47 = vcombine.high %v7429_v58, %v7430_v48  ;;  %v3369_v8 = vadd.f32 %v3368_v56, %v5583_v27  ;;  %v7442_v58 = vld [vmem:[#allocation42_spill] sm:$0xff]  ;;  %v7443_v48 = vld [vmem:[#allocation44_spill] sm:$0xff] }
  0xb3   : > { %7428 = vst [vmem:[#allocation12_spill] sm:$0xff] %v5651_v45  ;;  %v5659_v14 = vsel %vm553_vm6, %v7431_v62, 0.0  ;;  %v5667_v4 = vsel %vm553_vm6, %v7433_v60, 0.0  ;;  %v3400_v12 = vadd.f32 %v3399_v33, %v5591_v5  ;;  %v3431_v60 = vadd.f32 %v3430_v43, %v5602_v10  ;;  %v7451_v10 = vld [vmem:[#allocation45_spill] sm:$0xff]  ;;  %v7452_v5 = vld [vmem:[#allocation46_spill] sm:$0xff] }
  0xb4   : > { %7432 = vst [vmem:[#allocation37_spill] sm:$0xff] %v5659_v14  ;;  %7434 = vst [vmem:[#allocation38_spill] sm:$0xff] %v5667_v4  ;;  %v5678_v62 = vsel %vm553_vm6, %v7436_v47, 0.0  ;;  %v7440_v49 = vcombine.low %v7438_v13, %v7439_v1  ;;  %v7444_v0 = vcombine.low %v7442_v58, %v7443_v48  ;;  %v7446_v56 = vcombine.high %v7438_v13, %v7439_v1  ;;  %v7448_v47 = vld [vmem:[#allocation14_spill] sm:$0xff] }
  0xb5   : > { %7437 = vst [vmem:[#allocation39_spill] sm:$0xff] %v5678_v62  ;;  %v3339_v43 = vadd.f32 %v3338_v57, %v5613_v32  ;;  %vm560_vm13 = vcmp.lt.s32.totalorder %v7448_v47, %v4578_v24  ;;  %v3370_v1 = vadd.f32 %v3369_v8, %v5621_v11  ;;  %v3401_v13 = vadd.f32 %v3400_v12, %v5629_v26  ;;  %v7465_v26 = vld [vmem:[#allocation50_spill] sm:$0xff] }
  0xb6   : > { %v5689_v40 = vsel %vm554_vm7, %v7440_v49, 0.0  ;;  %v5697_v15 = vsel %vm554_vm7, %v7444_v0, 0.0  ;;  %v5705_v33 = vsel %vm554_vm7, %v7446_v56, 0.0  ;;  %v7449_v49 = vcombine.high %v7442_v58, %v7443_v48  ;;  %v7455_v58 = vld [vmem:[#allocation47_spill] sm:$0xff]  ;;  %v7456_v48 = vld [vmem:[#allocation48_spill] sm:$0xff] }
  0xb7   : > { %7441 = vst [vmem:[#allocation40_spill] sm:$0xff] %v5689_v40  ;;  %7445 = vst [vmem:[#allocation13_spill] sm:$0xff] %v5697_v15  ;;  %v3432_v56 = vadd.f32 %v3431_v60, %v5640_v44  ;;  %v7453_v57 = vcombine.low %v7451_v10, %v7452_v5  ;;  %v7457_v27 = vcombine.low %v7455_v58, %v7456_v48  ;;  %v7464_v44 = vld [vmem:[#allocation49_spill] sm:$0xff] }
  0xb8   : > { %7447 = vst [vmem:[#allocation41_spill] sm:$0xff] %v5705_v33  ;;  %v5716_v0 = vsel %vm554_vm7, %v7449_v49, 0.0  ;;  %v7459_v8 = vcombine.high %v7451_v10, %v7452_v5  ;;  %v3340_v60 = vadd.f32 %v3339_v43, %v5651_v45  ;;  %v7461_v49 = vld [vmem:[#allocation15_spill] sm:$0xff]  ;;  %v3371_v5 = vadd.f32 %v3370_v1, %v5659_v14 }
  0xb9   : > { %7450 = vst [vmem:[#allocation43_spill] sm:$0xff] %v5716_v0  ;;  %v5727_v32 = vsel %vm555_vm8, %v7453_v57, 0.0  ;;  %v5735_v16 = vsel %vm555_vm8, %v7457_v27, 0.0  ;;  %vm561_vm14 = vcmp.lt.s32.totalorder %v7461_v49, %v4578_v24  ;;  %v7462_v57 = vcombine.high %v7455_v58, %v7456_v48  ;;  %v7468_v58 = vld [vmem:[#allocation51_spill] sm:$0xff]  ;;  %v7469_v48 = vld [vmem:[#allocation52_spill] sm:$0xff] }
  0xba   : > { %7454 = vst [vmem:[#allocation42_spill] sm:$0xff] %v5727_v32  ;;  %7458 = vst [vmem:[#allocation44_spill] sm:$0xff] %v5735_v16  ;;  %v5743_v12 = vsel %vm555_vm8, %v7459_v8, 0.0  ;;  %v3402_v10 = vadd.f32 %v3401_v13, %v5667_v4  ;;  %v3433_v8 = vadd.f32 %v3432_v56, %v5678_v62  ;;  %v7466_v43 = vcombine.low %v7464_v44, %v7465_v26  ;;  %v7477_v62 = vld [vmem:[#allocation53_spill] sm:$0xff]  ;;  %v7478_v4 = vld [vmem:[#allocation54_spill] sm:$0xff] }
  0xbb   : > { %7460 = vst [vmem:[#allocation14_spill] sm:$0xff] %v5743_v12  ;;  %v5754_v27 = vsel %vm555_vm8, %v7462_v57, 0.0  ;;  %v7470_v11 = vcombine.low %v7468_v58, %v7469_v48  ;;  %v7472_v1 = vcombine.high %v7464_v44, %v7465_v26  ;;  %v3341_v56 = vadd.f32 %v3340_v60, %v5689_v40  ;;  %v7474_v57 = vld [vmem:[#allocation16_spill] sm:$0xff] }
  0xbc   : > { %7463 = vst [vmem:[#allocation45_spill] sm:$0xff] %v5754_v27  ;;  %v5765_v45 = vsel %vm556_vm9, %v7466_v43, 0.0  ;;  %vm562_vm15 = vcmp.lt.s32.totalorder %v7474_v57, %v4578_v24  ;;  %v7475_v43 = vcombine.high %v7468_v58, %v7469_v48  ;;  %v3372_v26 = vadd.f32 %v3371_v5, %v5697_v15  ;;  %v7481_v58 = vld [vmem:[#allocation55_spill] sm:$0xff]  ;;  %v7482_v48 = vld [vmem:[#allocation56_spill] sm:$0xff] }
  0xbd   : > { %7467 = vst [vmem:[#allocation46_spill] sm:$0xff] %v5765_v45  ;;  %v5773_v17 = vsel %vm556_vm9, %v7470_v11, 0.0  ;;  %v5781_v13 = vsel %vm556_vm9, %v7472_v1, 0.0  ;;  %v3403_v44 = vadd.f32 %v3402_v10, %v5705_v33  ;;  %v3434_v1 = vadd.f32 %v3433_v8, %v5716_v0  ;;  %v7490_v0 = vld [vmem:[#allocation57_spill] sm:$0xff]  ;;  %v7491_v33 = vld [vmem:[#allocation59_spill] sm:$0xff] }
  0xbe   : > { %7471 = vst [vmem:[#allocation47_spill] sm:$0xff] %v5773_v17  ;;  %7473 = vst [vmem:[#allocation48_spill] sm:$0xff] %v5781_v13  ;;  %v5792_v11 = vsel %vm556_vm9, %v7475_v43, 0.0  ;;  %v7479_v60 = vcombine.low %v7477_v62, %v7478_v4  ;;  %v7483_v14 = vcombine.low %v7481_v58, %v7482_v48  ;;  %v7485_v5 = vcombine.high %v7477_v62, %v7478_v4  ;;  %v7487_v43 = vld [vmem:[#allocation17_spill] sm:$0xff] }
  0xbf   : > { %7476 = vst [vmem:[#allocation15_spill] sm:$0xff] %v5792_v11  ;;  %v3342_v8 = vadd.f32 %v3341_v56, %v5727_v32  ;;  %vm563_vm0 = vcmp.lt.s32.totalorder %v7487_v43, %v4578_v24  ;;  %v3373_v4 = vadd.f32 %v3372_v26, %v5735_v16  ;;  %v3404_v62 = vadd.f32 %v3403_v44, %v5743_v12  ;;  %v7504_v12 = vld [vmem:[#allocation62_spill] sm:$0xff] }
  0xc0   : > { %v5803_v40 = vsel %vm557_vm10, %v7479_v60, 0.0  ;;  %v5811_v18 = vsel %vm557_vm10, %v7483_v14, 0.0  ;;  %v5819_v10 = vsel %vm557_vm10, %v7485_v5, 0.0  ;;  %v7488_v60 = vcombine.high %v7481_v58, %v7482_v48  ;;  %v7494_v58 = vld [vmem:[#allocation58_spill] sm:$0xff]  ;;  %v7495_v48 = vld [vmem:[#allocation60_spill] sm:$0xff] }
  0xc1   : > { %7480 = vst [vmem:[#allocation49_spill] sm:$0xff] %v5803_v40  ;;  %7484 = vst [vmem:[#allocation50_spill] sm:$0xff] %v5811_v18  ;;  %v3435_v5 = vadd.f32 %v3434_v1, %v5754_v27  ;;  %v7492_v56 = vcombine.low %v7490_v0, %v7491_v33  ;;  %v7496_v15 = vcombine.low %v7494_v58, %v7495_v48  ;;  %v7503_v27 = vld [vmem:[#allocation61_spill] sm:$0xff] }
  0xc2   : > { %7486 = vst [vmem:[#allocation51_spill] sm:$0xff] %v5819_v10  ;;  %v5830_v14 = vsel %vm557_vm10, %v7488_v60, 0.0  ;;  %v7498_v26 = vcombine.high %v7490_v0, %v7491_v33  ;;  %v3343_v1 = vadd.f32 %v3342_v8, %v5765_v45  ;;  %v7500_v60 = vld [vmem:[#allocation18_spill] sm:$0xff]  ;;  %v3374_v33 = vadd.f32 %v3373_v4, %v5773_v17 }
  0xc3   : > { %7489 = vst [vmem:[#allocation52_spill] sm:$0xff] %v5830_v14  ;;  %v5841_v32 = vsel %vm558_vm11, %v7492_v56, 0.0  ;;  %v5849_v9 = vsel %vm558_vm11, %v7496_v15, 0.0  ;;  %vm564_vm1 = vcmp.lt.s32.totalorder %v7500_v60, %v4578_v24  ;;  %v7501_v56 = vcombine.high %v7494_v58, %v7495_v48  ;;  %v7507_v58 = vld [vmem:[#allocation63_spill] sm:$0xff]  ;;  %v7508_v48 = vld [vmem:[#allocation64_spill] sm:$0xff] }
  0xc4   : > { %7493 = vst [vmem:[#allocation16_spill] sm:$0xff] %v5841_v32  ;;  %7497 = vst [vmem:[#allocation53_spill] sm:$0xff] %v5849_v9  ;;  %v5857_v44 = vsel %vm558_vm11, %v7498_v26, 0.0  ;;  %v3405_v0 = vadd.f32 %v3404_v62, %v5781_v13  ;;  %v3436_v26 = vadd.f32 %v3435_v5, %v5792_v11  ;;  %v7505_v8 = vcombine.low %v7503_v27, %v7504_v12  ;;  %v7516_v11 = vld [vmem:[#allocation65_spill] sm:$0xff]  ;;  %v7517_v13 = vld [vmem:[#allocation67_spill] sm:$0xff] }
  0xc5   : > { %7499 = vst [vmem:[#allocation54_spill] sm:$0xff] %v5857_v44  ;;  %v5868_v15 = vsel %vm558_vm11, %v7501_v56, 0.0  ;;  %v7509_v16 = vcombine.low %v7507_v58, %v7508_v48  ;;  %v7511_v4 = vcombine.high %v7503_v27, %v7504_v12  ;;  %v3344_v5 = vadd.f32 %v3343_v1, %v5803_v40  ;;  %v7513_v56 = vld [vmem:[#allocation19_spill] sm:$0xff] }
  0xc6   : > { %7502 = vst [vmem:[#allocation55_spill] sm:$0xff] %v5868_v15  ;;  %v5879_v45 = vsel %vm559_vm12, %v7505_v8, 0.0  ;;  %vm565_vm2 = vcmp.lt.s32.totalorder %v7513_v56, %v4578_v24  ;;  %v7514_v8 = vcombine.high %v7507_v58, %v7508_v48  ;;  %v3375_v12 = vadd.f32 %v3374_v33, %v5811_v18  ;;  %v7520_v58 = vld [vmem:[#allocation66_spill] sm:$0xff]  ;;  %v7521_v48 = vld [vmem:[#allocation68_spill] sm:$0xff] }
  0xc7   : > { %7506 = vst [vmem:[#allocation56_spill] sm:$0xff] %v5879_v45  ;;  %v5887_v50 = vsel %vm559_vm12, %v7509_v16, 0.0  ;;  %v5895_v62 = vsel %vm559_vm12, %v7511_v4, 0.0  ;;  %v3406_v27 = vadd.f32 %v3405_v0, %v5819_v10  ;;  %v3437_v4 = vadd.f32 %v3436_v26, %v5830_v14  ;;  %v7529_v14 = vld [vmem:[#allocation69_spill] sm:$0xff]  ;;  %v7530_v10 = vld [vmem:[#allocation70_spill] sm:$0xff] }
  0xc8   : > { %7510 = vst [vmem:[#allocation17_spill] sm:$0xff] %v5887_v50  ;;  %7512 = vst [vmem:[#allocation57_spill] sm:$0xff] %v5895_v62  ;;  %v5906_v16 = vsel %vm559_vm12, %v7514_v8, 0.0  ;;  %v7518_v1 = vcombine.low %v7516_v11, %v7517_v13  ;;  %v7522_v17 = vcombine.low %v7520_v58, %v7521_v48  ;;  %v7524_v33 = vcombine.high %v7516_v11, %v7517_v13  ;;  %v7526_v8 = vld [vmem:[#allocation20_spill] sm:$0xff] }
  0xc9   : > { %7515 = vst [vmem:[#allocation59_spill] sm:$0xff] %v5906_v16  ;;  %v3345_v26 = vadd.f32 %v3344_v5, %v5841_v32  ;;  %vm566_vm3 = vcmp.lt.s32.totalorder %v7526_v8, %v4578_v24  ;;  %v3376_v13 = vadd.f32 %v3375_v12, %v5849_v9  ;;  %v3407_v11 = vadd.f32 %v3406_v27, %v5857_v44  ;;  %v7543_v44 = vld [vmem:[#allocation75_spill] sm:$0xff] }
  0xca   : > { %v5917_v40 = vsel %vm560_vm13, %v7518_v1, 0.0  ;;  %v5925_v31 = vsel %vm560_vm13, %v7522_v17, 0.0  ;;  %v5933_v0 = vsel %vm560_vm13, %v7524_v33, 0.0  ;;  %v7527_v1 = vcombine.high %v7520_v58, %v7521_v48  ;;  %v7533_v58 = vld [vmem:[#allocation71_spill] sm:$0xff]  ;;  %v7534_v48 = vld [vmem:[#allocation72_spill] sm:$0xff] }
  0xcb   : > { %7519 = vst [vmem:[#allocation58_spill] sm:$0xff] %v5917_v40  ;;  %7523 = vst [vmem:[#allocation60_spill] sm:$0xff] %v5925_v31  ;;  %v3438_v33 = vadd.f32 %v3437_v4, %v5868_v15  ;;  %v7531_v5 = vcombine.low %v7529_v14, %v7530_v10  ;;  %v7535_v18 = vcombine.low %v7533_v58, %v7534_v48  ;;  %v7542_v15 = vld [vmem:[#allocation73_spill] sm:$0xff] }
  0xcc   : > { %7525 = vst [vmem:[#allocation18_spill] sm:$0xff] %v5933_v0  ;;  %v5944_v17 = vsel %vm560_vm13, %v7527_v1, 0.0  ;;  %v7537_v12 = vcombine.high %v7529_v14, %v7530_v10  ;;  %v3346_v4 = vadd.f32 %v3345_v26, %v5879_v45  ;;  %v7539_v1 = vld [vmem:[#allocation21_spill] sm:$0xff]  ;;  %v3377_v10 = vadd.f32 %v3376_v13, %v5887_v50 }
  0xcd   : > { %7528 = vst [vmem:[#allocation61_spill] sm:$0xff] %v5944_v17  ;;  %v5955_v32 = vsel %vm561_vm14, %v7531_v5, 0.0  ;;  %v5963_v47 = vsel %vm561_vm14, %v7535_v18, 0.0  ;;  %vm567_vm4 = vcmp.lt.s32.totalorder %v7539_v1, %v4578_v24  ;;  %v7540_v5 = vcombine.high %v7533_v58, %v7534_v48  ;;  %v7546_v58 = vld [vmem:[#allocation74_spill] sm:$0xff]  ;;  %v7547_v48 = vld [vmem:[#allocation76_spill] sm:$0xff] }
  0xce   : > { %7532 = vst [vmem:[#allocation62_spill] sm:$0xff] %v5955_v32  ;;  %7536 = vst [vmem:[#allocation63_spill] sm:$0xff] %v5963_v47  ;;  %v5971_v27 = vsel %vm561_vm14, %v7537_v12, 0.0  ;;  %v3408_v14 = vadd.f32 %v3407_v11, %v5895_v62  ;;  %v3439_v12 = vadd.f32 %v3438_v33, %v5906_v16  ;;  %v7544_v26 = vcombine.low %v7542_v15, %v7543_v44  ;;  %v7555_v16 = vld [vmem:[#allocation77_spill] sm:$0xff]  ;;  %v7556_v62 = vld [vmem:[#allocation79_spill] sm:$0xff] }
  0xcf   : > { %7538 = vst [vmem:[#allocation64_spill] sm:$0xff] %v5971_v27  ;;  %v5982_v18 = vsel %vm561_vm14, %v7540_v5, 0.0  ;;  %v7548_v9 = vcombine.low %v7546_v58, %v7547_v48  ;;  %v7550_v13 = vcombine.high %v7542_v15, %v7543_v44  ;;  %v3347_v33 = vadd.f32 %v3346_v4, %v5917_v40  ;;  %v7552_v5 = vld [vmem:[#allocation22_spill] sm:$0xff] }
  0xd0   : > { %7541 = vst [vmem:[#allocation19_spill] sm:$0xff] %v5982_v18  ;;  %v5993_v45 = vsel %vm562_vm15, %v7544_v26, 0.0  ;;  %vm568_vm5 = vcmp.lt.s32.totalorder %v7552_v5, %v4578_v24  ;;  %v7553_v26 = vcombine.high %v7546_v58, %v7547_v48  ;;  %v3378_v44 = vadd.f32 %v3377_v10, %v5925_v31  ;;  %v7559_v58 = vld [vmem:[#allocation78_spill] sm:$0xff]  ;;  %v7560_v48 = vld [vmem:[#allocation80_spill] sm:$0xff] }
  0xd1   : > { %7545 = vst [vmem:[#allocation65_spill] sm:$0xff] %v5993_v45  ;;  %v6001_v49 = vsel %vm562_vm15, %v7548_v9, 0.0  ;;  %v6009_v11 = vsel %vm562_vm15, %v7550_v13, 0.0  ;;  %v3409_v15 = vadd.f32 %v3408_v14, %v5933_v0  ;;  %v3440_v13 = vadd.f32 %v3439_v12, %v5944_v17  ;;  %v7568_v17 = vld [vmem:[#allocation81_spill] sm:$0xff]  ;;  %v7569_v0 = vld [vmem:[#allocation82_spill] sm:$0xff] }
  0xd2   : > { %7549 = vst [vmem:[#allocation67_spill] sm:$0xff] %v6001_v49  ;;  %7551 = vst [vmem:[#allocation66_spill] sm:$0xff] %v6009_v11  ;;  %v6020_v9 = vsel %vm562_vm15, %v7553_v26, 0.0  ;;  %v7557_v4 = vcombine.low %v7555_v16, %v7556_v62  ;;  %v7561_v50 = vcombine.low %v7559_v58, %v7560_v48  ;;  %v7563_v10 = vcombine.high %v7555_v16, %v7556_v62  ;;  %v7565_v26 = vld [vmem:[#allocation23_spill] sm:$0xff] }
  0xd3   : > { %7554 = vst [vmem:[#allocation68_spill] sm:$0xff] %v6020_v9  ;;  %v3348_v12 = vadd.f32 %v3347_v33, %v5955_v32  ;;  %vm569_vm6 = vcmp.lt.s32.totalorder %v7565_v26, %v4578_v24  ;;  %v3379_v62 = vadd.f32 %v3378_v44, %v5963_v47  ;;  %v3410_v16 = vadd.f32 %v3409_v15, %v5971_v27  ;;  %v7582_v27 = vld [vmem:[#allocation86_spill] sm:$0xff] }
  0xd4   : > { %v6031_v40 = vsel %vm563_vm0, %v7557_v4, 0.0  ;;  %v6039_v57 = vsel %vm563_vm0, %v7561_v50, 0.0  ;;  %v6047_v14 = vsel %vm563_vm0, %v7563_v10, 0.0  ;;  %v7566_v4 = vcombine.high %v7559_v58, %v7560_v48  ;;  %v7572_v58 = vld [vmem:[#allocation83_spill] sm:$0xff]  ;;  %v7573_v48 = vld [vmem:[#allocation84_spill] sm:$0xff] }
  0xd5   : > { %7558 = vst [vmem:[#allocation20_spill] sm:$0xff] %v6031_v40  ;;  %7562 = vst [vmem:[#allocation69_spill] sm:$0xff] %v6039_v57  ;;  %v3441_v10 = vadd.f32 %v3440_v13, %v5982_v18  ;;  %v7570_v33 = vcombine.low %v7568_v17, %v7569_v0  ;;  %v7574_v31 = vcombine.low %v7572_v58, %v7573_v48  ;;  %v7581_v18 = vld [vmem:[#allocation85_spill] sm:$0xff] }
  0xd6   : > { %7564 = vst [vmem:[#allocation70_spill] sm:$0xff] %v6047_v14  ;;  %v6058_v50 = vsel %vm563_vm0, %v7566_v4, 0.0  ;;  %v7576_v44 = vcombine.high %v7568_v17, %v7569_v0  ;;  %v3349_v13 = vadd.f32 %v3348_v12, %v5993_v45  ;;  %v7578_v4 = vld [vmem:[#allocation24_spill] sm:$0xff]  ;;  %v3380_v0 = vadd.f32 %v3379_v62, %v6001_v49 }
  0xd7   : > { %7567 = vst [vmem:[#allocation71_spill] sm:$0xff] %v6058_v50  ;;  %v6069_v32 = vsel %vm564_vm1, %v7570_v33, 0.0  ;;  %v6077_v43 = vsel %vm564_vm1, %v7574_v31, 0.0  ;;  %vm570_vm7 = vcmp.lt.s32.totalorder %v7578_v4, %v4578_v24  ;;  %v7579_v33 = vcombine.high %v7572_v58, %v7573_v48  ;;  %v7585_v58 = vld [vmem:[#allocation87_spill] sm:$0xff]  ;;  %v7586_v48 = vld [vmem:[#allocation88_spill] sm:$0xff] }
  0xd8   : > { %7571 = vst [vmem:[#allocation72_spill] sm:$0xff] %v6069_v32  ;;  %7575 = vst [vmem:[#allocation21_spill] sm:$0xff] %v6077_v43  ;;  %v6085_v15 = vsel %vm564_vm1, %v7576_v44, 0.0  ;;  %v3411_v17 = vadd.f32 %v3410_v16, %v6009_v11  ;;  %v3442_v44 = vadd.f32 %v3441_v10, %v6020_v9  ;;  %v7583_v12 = vcombine.low %v7581_v18, %v7582_v27  ;;  %v7594_v9 = vld [vmem:[#allocation89_spill] sm:$0xff]  ;;  %v7595_v11 = vld [vmem:[#allocation91_spill] sm:$0xff] }
  0xd9   : > { %7577 = vst [vmem:[#allocation73_spill] sm:$0xff] %v6085_v15  ;;  %v6096_v31 = vsel %vm564_vm1, %v7579_v33, 0.0  ;;  %v7587_v47 = vcombine.low %v7585_v58, %v7586_v48  ;;  %v7589_v62 = vcombine.high %v7581_v18, %v7582_v27  ;;  %v3350_v10 = vadd.f32 %v3349_v13, %v6031_v40  ;;  %v7591_v33 = vld [vmem:[#allocation25_spill] sm:$0xff] }
  0xda   : > { %7580 = vst [vmem:[#allocation75_spill] sm:$0xff] %v6096_v31  ;;  %v6107_v45 = vsel %vm565_vm2, %v7583_v12, 0.0  ;;  %vm571_vm8 = vcmp.lt.s32.totalorder %v7591_v33, %v4578_v24  ;;  %v7592_v12 = vcombine.high %v7585_v58, %v7586_v48  ;;  %v3381_v27 = vadd.f32 %v3380_v0, %v6039_v57  ;;  %v7598_v58 = vld [vmem:[#allocation90_spill] sm:$0xff]  ;;  %v7599_v48 = vld [vmem:[#allocation92_spill] sm:$0xff] }
  0xdb   : > { %7584 = vst [vmem:[#allocation74_spill] sm:$0xff] %v6107_v45  ;;  %v6115_v60 = vsel %vm565_vm2, %v7587_v47, 0.0  ;;  %v6123_v16 = vsel %vm565_vm2, %v7589_v62, 0.0  ;;  %v3412_v18 = vadd.f32 %v3411_v17, %v6047_v14  ;;  %v3443_v62 = vadd.f32 %v3442_v44, %v6058_v50  ;;  %v7607_v50 = vld [vmem:[#allocation93_spill] sm:$0xff]  ;;  %v7608_v14 = vld [vmem:[#allocation94_spill] sm:$0xff] }
  0xdc   : > { %7588 = vst [vmem:[#allocation76_spill] sm:$0xff] %v6115_v60  ;;  %7590 = vst [vmem:[#allocation22_spill] sm:$0xff] %v6123_v16  ;;  %v6134_v47 = vsel %vm565_vm2, %v7592_v12, 0.0  ;;  %v7596_v13 = vcombine.low %v7594_v9, %v7595_v11  ;;  %v7600_v49 = vcombine.low %v7598_v58, %v7599_v48  ;;  %v7602_v0 = vcombine.high %v7594_v9, %v7595_v11  ;;  %v7604_v12 = vld [vmem:[#allocation26_spill] sm:$0xff] }
  0xdd   : > { %7593 = vst [vmem:[#allocation77_spill] sm:$0xff] %v6134_v47  ;;  %v3351_v44 = vadd.f32 %v3350_v10, %v6069_v32  ;;  %vm572_vm9 = vcmp.lt.s32.totalorder %v7604_v12, %v4578_v24  ;;  %v3382_v11 = vadd.f32 %v3381_v27, %v6077_v43  ;;  %v3413_v9 = vadd.f32 %v3412_v18, %v6085_v15  ;;  %v7621_v15 = vld [vmem:[#allocation98_spill] sm:$0xff] }
  0xde   : > { %v6145_v40 = vsel %vm566_vm3, %v7596_v13, 0.0  ;;  %v6153_v56 = vsel %vm566_vm3, %v7600_v49, 0.0  ;;  %v6161_v17 = vsel %vm566_vm3, %v7602_v0, 0.0  ;;  %v7605_v13 = vcombine.high %v7598_v58, %v7599_v48  ;;  %v7611_v58 = vld [vmem:[#allocation95_spill] sm:$0xff]  ;;  %v7612_v48 = vld [vmem:[#allocation96_spill] sm:$0xff] }
  0xdf   : > { %7597 = vst [vmem:[#allocation79_spill] sm:$0xff] %v6145_v40  ;;  %7601 = vst [vmem:[#allocation78_spill] sm:$0xff] %v6153_v56  ;;  %v3444_v0 = vadd.f32 %v3443_v62, %v6096_v31  ;;  %v7609_v10 = vcombine.low %v7607_v50, %v7608_v14  ;;  %v7613_v57 = vcombine.low %v7611_v58, %v7612_v48  ;;  %v7620_v31 = vld [vmem:[#allocation97_spill] sm:$0xff] }
  0xe0   : > { %7603 = vst [vmem:[#allocation80_spill] sm:$0xff] %v6161_v17  ;;  %v6172_v49 = vsel %vm566_vm3, %v7605_v13, 0.0  ;;  %v7615_v27 = vcombine.high %v7607_v50, %v7608_v14  ;;  %v3352_v62 = vadd.f32 %v3351_v44, %v6107_v45  ;;  %v7617_v13 = vld [vmem:[#allocation27_spill] sm:$0xff]  ;;  %v3383_v14 = vadd.f32 %v3382_v11, %v6115_v60 }
  0xe1   : > { %7606 = vst [vmem:[#allocation23_spill] sm:$0xff] %v6172_v49  ;;  %v6183_v32 = vsel %vm567_vm4, %v7609_v10, 0.0  ;;  %v6191_v8 = vsel %vm567_vm4, %v7613_v57, 0.0  ;;  %vm573_vm10 = vcmp.lt.s32.totalorder %v7617_v13, %v4578_v24  ;;  %v7618_v10 = vcombine.high %v7611_v58, %v7612_v48  ;;  %v7624_v58 = vld [vmem:[#allocation99_spill] sm:$0xff]  ;;  %v7625_v48 = vld [vmem:[#allocation100_spill] sm:$0xff] }
  0xe2   : > { %7610 = vst [vmem:[#allocation81_spill] sm:$0xff] %v6183_v32  ;;  %7614 = vst [vmem:[#allocation82_spill] sm:$0xff] %v6191_v8  ;;  %v6199_v18 = vsel %vm567_vm4, %v7615_v27, 0.0  ;;  %v3414_v50 = vadd.f32 %v3413_v9, %v6123_v16  ;;  %v3445_v27 = vadd.f32 %v3444_v0, %v6134_v47  ;;  %v7622_v44 = vcombine.low %v7620_v31, %v7621_v15  ;;  %v7633_v47 = vld [vmem:[#allocation101_spill] sm:$0xff]  ;;  %v7634_v16 = vld [vmem:[#allocation102_spill] sm:$0xff] }
  0xe3   : > { %7616 = vst [vmem:[#allocation83_spill] sm:$0xff] %v6199_v18  ;;  %v6210_v57 = vsel %vm567_vm4, %v7618_v10, 0.0  ;;  %v7626_v43 = vcombine.low %v7624_v58, %v7625_v48  ;;  %v7628_v11 = vcombine.high %v7620_v31, %v7621_v15  ;;  %v3353_v0 = vadd.f32 %v3352_v62, %v6145_v40  ;;  %v7630_v10 = vld [vmem:[#allocation28_spill] sm:$0xff] }
  0xe4   : > { %7619 = vst [vmem:[#allocation84_spill] sm:$0xff] %v6210_v57  ;;  %v6221_v45 = vsel %vm568_vm5, %v7622_v44, 0.0  ;;  %vm574_vm11 = vcmp.lt.s32.totalorder %v7630_v10, %v4578_v24  ;;  %v7631_v44 = vcombine.high %v7624_v58, %v7625_v48  ;;  %v3384_v15 = vadd.f32 %v3383_v14, %v6153_v56  ;;  %v7637_v58 = vld [vmem:[#allocation103_spill] sm:$0xff]  ;;  %v7638_v48 = vld [vmem:[#allocation104_spill] sm:$0xff] }
  0xe5   : > { %7623 = vst [vmem:[#allocation24_spill] sm:$0xff] %v6221_v45  ;;  %v6229_v1 = vsel %vm568_vm5, %v7626_v43, 0.0  ;;  %v6237_v9 = vsel %vm568_vm5, %v7628_v11, 0.0  ;;  %v3415_v31 = vadd.f32 %v3414_v50, %v6161_v17  ;;  %v3446_v11 = vadd.f32 %v3445_v27, %v6172_v49  ;;  %v7644_v49 = vld [vmem:[#allocation105_spill] sm:$0xff]  ;;  %v7645_v17 = vld [vmem:[#allocation107_spill] sm:$0xff] }
  0xe6   : > { %7627 = vst [vmem:[#allocation85_spill] sm:$0xff] %v6229_v1  ;;  %7629 = vst [vmem:[#allocation86_spill] sm:$0xff] %v6237_v9  ;;  %v6248_v43 = vsel %vm568_vm5, %v7631_v44, 0.0  ;;  %v7635_v62 = vcombine.low %v7633_v47, %v7634_v16  ;;  %v7639_v60 = vcombine.low %v7637_v58, %v7638_v48  ;;  %v7640_v14 = vcombine.high %v7633_v47, %v7634_v16  ;;  %v7641_v44 = vld [vmem:[#allocation29_spill] sm:$0xff] }
  0xe7   : > { %7632 = vst [vmem:[#allocation87_spill] sm:$0xff] %v6248_v43  ;;  %v3354_v27 = vadd.f32 %v3353_v0, %v6183_v32  ;;  %vm575_vm12 = vcmp.lt.s32.totalorder %v7641_v44, %v4578_v24  ;;  %v3385_v16 = vadd.f32 %v3384_v15, %v6191_v8  ;;  %v3416_v47 = vadd.f32 %v3415_v31, %v6199_v18  ;;  %v7656_v18 = vld [vmem:[#allocation111_spill] sm:$0xff] }
  0xe8   : > { %v6259_v40 = vsel %vm569_vm6, %v7635_v62, 0.0  ;;  %v6267_v5 = vsel %vm569_vm6, %v7639_v60, 0.0  ;;  %v6275_v50 = vsel %vm569_vm6, %v7640_v14, 0.0  ;;  %v7642_v62 = vcombine.high %v7637_v58, %v7638_v48  ;;  %v7648_v58 = vld [vmem:[#allocation106_spill] sm:$0xff]  ;;  %v7649_v48 = vld [vmem:[#allocation108_spill] sm:$0xff] }
  0xe9   : > { %7636 = vst [vmem:[#allocation88_spill] sm:$0xff] %v6259_v40  ;;  %v3447_v14 = vadd.f32 %v3446_v11, %v6210_v57  ;;  %v7646_v0 = vcombine.low %v7644_v49, %v7645_v17  ;;  %v7650_v56 = vcombine.low %v7648_v58, %v7649_v48  ;;  %v7651_v15 = vcombine.high %v7644_v49, %v7645_v17  ;;  %v7655_v57 = vld [vmem:[#allocation109_spill] sm:$0xff] }
  0xea   : > { %v6286_v60 = vsel %vm569_vm6, %v7642_v62, 0.0  ;;  %v3355_v11 = vadd.f32 %v3354_v27, %v6221_v45  ;;  %v7652_v62 = vld [vmem:[#allocation30_spill] sm:$0xff]  ;;  %v3386_v17 = vadd.f32 %v3385_v16, %v6229_v1  ;;  %v3417_v49 = vadd.f32 %v3416_v47, %v6237_v9  ;;  %v7665_v9 = vld [vmem:[#allocation115_spill] sm:$0xff] }
  0xeb   : > { %7643 = vst [vmem:[#allocation25_spill] sm:$0xff] %v6286_v60  ;;  %v6297_v32 = vsel %vm570_vm7, %v7646_v0, 0.0  ;;  %v6305_v26 = vsel %vm570_vm7, %v7650_v56, 0.0  ;;  %v6313_v31 = vsel %vm570_vm7, %v7651_v15, 0.0  ;;  %vm576_vm13 = vcmp.lt.s32.totalorder %v7652_v62, %v4578_v24 }
  0xec   : > { %7647 = vst [vmem:[#allocation89_spill] sm:$0xff] %v6297_v32  ;;  %v7653_v0 = vcombine.high %v7648_v58, %v7649_v48  ;;  %v3448_v15 = vadd.f32 %v3447_v14, %v6248_v43  ;;  %v7657_v27 = vcombine.low %v7655_v57, %v7656_v18  ;;  %v7658_v58 = vld [vmem:[#allocation110_spill] sm:$0xff]  ;;  %v7659_v48 = vld [vmem:[#allocation112_spill] sm:$0xff]  ;;  %v7661_v16 = vcombine.high %v7655_v57, %v7656_v18  ;;  %v7664_v43 = vld [vmem:[#allocation113_spill] sm:$0xff] }
  0xed   : > { %v7660_v8 = vcombine.low %v7658_v58, %v7659_v48  ;;  %v3356_v14 = vadd.f32 %v3355_v11, %v6259_v40  ;;  %v3387_v18 = vadd.f32 %v3386_v17, %v6267_v5  ;;  %v3418_v57 = vadd.f32 %v3417_v49, %v6275_v50 }
  0xee   : > { %v6324_v56 = vsel %vm570_vm7, %v7653_v0, 0.0  ;;  %v6335_v45 = vsel %vm571_vm8, %v7657_v27, 0.0  ;;  %v6351_v47 = vsel %vm571_vm8, %v7661_v16, 0.0  ;;  %v7662_v0 = vld [vmem:[#allocation31_spill] sm:$0xff]  ;;  %v7663_v27 = vcombine.high %v7658_v58, %v7659_v48  ;;  %v7667_v58 = vld [vmem:[#allocation114_spill] sm:$0xff]  ;;  %v7668_v48 = vld [vmem:[#allocation116_spill] sm:$0xff] }
  0xef   : > { %7654 = vst [vmem:[#allocation91_spill] sm:$0xff] %v6324_v56  ;;  %v6343_v4 = vsel %vm571_vm8, %v7660_v8, 0.0  ;;  %vm577_vm14 = vcmp.lt.s32.totalorder %v7662_v0, %v4578_v24  ;;  %v3449_v16 = vadd.f32 %v3448_v15, %v6286_v60  ;;  %v7666_v11 = vcombine.low %v7664_v43, %v7665_v9 }
  0xf0   : > { %v6362_v8 = vsel %vm571_vm8, %v7663_v27, 0.0  ;;  %v7669_v1 = vcombine.low %v7667_v58, %v7668_v48  ;;  %v7670_v17 = vcombine.high %v7664_v43, %v7665_v9  ;;  %v3357_v15 = vadd.f32 %v3356_v14, %v6297_v32  ;;  %v7671_v27 = vld [vmem:[#allocation32_spill] sm:$0xff] }
  0xf1   : > { %v6373_v40 = vsel %vm572_vm9, %v7666_v11, 0.0  ;;  %vm578_vm15 = vcmp.lt.s32.totalorder %v7671_v27, %v4578_v24  ;;  %v7672_v11 = vcombine.high %v7667_v58, %v7668_v48  ;;  %v3388_v9 = vadd.f32 %v3387_v18, %v6305_v26  ;;  %v7674_v58 = vld [vmem:[#allocation117_spill] sm:$0xff]  ;;  %v7675_v48 = vld [vmem:[#allocation118_spill] sm:$0xff] }
  0xf2   : > { %v6381_v33 = vsel %vm572_vm9, %v7669_v1, 0.0  ;;  %v6389_v49 = vsel %vm572_vm9, %v7670_v17, 0.0  ;;  %v3419_v43 = vadd.f32 %v3418_v57, %v6313_v31  ;;  %v3450_v17 = vadd.f32 %v3449_v16, %v6324_v56 }
  0xf3   : > { %v6400_v1 = vsel %vm572_vm9, %v7672_v11, 0.0  ;;  %v7673_v14 = vcombine.low %v5272_v20, %v5275_v36  ;;  %v7676_v60 = vcombine.low %v7674_v58, %v7675_v48  ;;  %v7677_v18 = vcombine.high %v5272_v20, %v5275_v36 }
  0xf4   : > { %v3358_v16 = vadd.f32 %v3357_v15, %v6335_v45  ;;  %v7678_v11 = vcombine.high %v7674_v58, %v7675_v48  ;;  %v3420_v36 = vadd.f32 %v3419_v43, %v6351_v47  ;;  %v3451_v20 = vadd.f32 %v3450_v17, %v6362_v8 }
  0xf5   : > { %v6411_v32 = vsel %vm573_vm10, %v7673_v14, 0.0  ;;  %v6419_v12 = vsel %vm573_vm10, %v7676_v60, 0.0  ;;  %v6427_v57 = vsel %vm573_vm10, %v7677_v18, 0.0  ;;  %v3389_v60 = vadd.f32 %v3388_v9, %v6343_v4  ;;  %v7679_v18 = vld [vmem:[#allocation119_spill] sm:$0xff] }
  0xf6   : > { %v6436_v14 = vsel %vm573_vm10, %v7678_v11, 0.0  ;;  %v7680_v56 = vcombine.low %v5294_v21, %v7679_v18  ;;  %v7681_v13 = vcombine.low %v5307_v52, %v5319_v55  ;;  %v7682_v9 = vcombine.high %v5294_v21, %v7679_v18 }
  0xf7   : > { %v3359_v17 = vadd.f32 %v3358_v16, %v6373_v40  ;;  %v3390_v11 = vadd.f32 %v3389_v60, %v6381_v33  ;;  %v3452_v21 = vadd.f32 %v3451_v20, %v6400_v1  ;;  %v7684_v18 = vcombine.low %v5340_v30, %v5343_v34 }
  0xf8   : > { %v6447_v15 = vsel %vm574_vm11, %v7680_v56, 0.0  ;;  %v6455_v58 = vsel %vm574_vm11, %v7681_v13, 0.0  ;;  %v6463_v43 = vsel %vm574_vm11, %v7682_v9, 0.0  ;;  %v7683_v56 = vcombine.high %v5307_v52, %v5319_v55 }
  0xf9   : > { %v3421_v13 = vadd.f32 %v3420_v36, %v6389_v49  ;;  %v6483_v16 = vsel %vm575_vm12, %v7684_v18, 0.0  ;;  %v7685_v55 = vcombine.low %v5346_v28, %v5349_v59  ;;  %v7686_v10 = vcombine.high %v5340_v30, %v5343_v34 }
  0xfa   : > { %v6472_v48 = vsel %vm574_vm11, %v7683_v56, 0.0  ;;  %v3360_v36 = vadd.f32 %v3359_v17, %v6411_v32  ;;  %v7687_v20 = vcombine.high %v5346_v28, %v5349_v59  ;;  %v3391_v30 = vadd.f32 %v3390_v11, %v6419_v12 }
  0xfb   : > { %v6491_v52 = vsel %vm575_vm12, %v7685_v55, 0.0  ;;  %v6499_v60 = vsel %vm575_vm12, %v7686_v10, 0.0  ;;  %v3422_v34 = vadd.f32 %v3421_v13, %v6427_v57  ;;  %v3453_v56 = vadd.f32 %v3452_v21, %v6436_v14 }
  0xfc   : > { %v6511_v9 = vsel %vm575_vm12, %v7687_v20, 0.0  ;;  %v7688_v17 = vcombine.low %v5354_v42, %v5360_v2  ;;  %v7689_v28 = vcombine.low %v5357_v35, %v5363_v23  ;;  %v7690_v44 = vcombine.high %v5354_v42, %v5360_v2 }
  0xfd   : > { %v3361_v13 = vadd.f32 %v3360_v36, %v6447_v15  ;;  %v7691_v21 = vcombine.high %v5357_v35, %v5363_v23  ;;  %v3392_v10 = vadd.f32 %v3391_v30, %v6455_v58  ;;  %v3423_v20 = vadd.f32 %v3422_v34, %v6463_v43 }
  0xfe   : > { %v6522_v18 = vsel %vm576_vm13, %v7688_v17, 0.0  ;;  %v6530_v59 = vsel %vm576_vm13, %v7689_v28, 0.0  ;;  %v6538_v11 = vsel %vm576_vm13, %v7690_v44, 0.0  ;;  %v3454_v42 = vadd.f32 %v3453_v56, %v6472_v48 }
  0xff   : > { %v6547_v55 = vsel %vm576_vm13, %v7691_v21, 0.0  ;;  %v7692_v2 = vcombine.low %v5372_v37, %v5375_v25  ;;  %v7693_v35 = vcombine.low %v5382_v38, %v5385_v19  ;;  %v7694_v62 = vcombine.high %v5372_v37, %v5375_v25 }
 0x100   : > { %v3362_v34 = vadd.f32 %v3361_v13, %v6483_v16  ;;  %v7695_v56 = vcombine.high %v5382_v38, %v5385_v19  ;;  %v3393_v28 = vadd.f32 %v3392_v10, %v6491_v52  ;;  %v3424_v44 = vadd.f32 %v3423_v20, %v6499_v60 }
 0x101   : > { %v6559_v36 = vsel %vm577_vm14, %v7692_v2, 0.0  ;;  %v6567_v23 = vsel %vm577_vm14, %v7693_v35, 0.0  ;;  %v6575_v30 = vsel %vm577_vm14, %v7694_v62, 0.0  ;;  %v3455_v37 = vadd.f32 %v3454_v42, %v6511_v9 }
 0x102   : > { %v6584_v17 = vsel %vm577_vm14, %v7695_v56, 0.0  ;;  %v7696_v25 = vcombine.low %v5398_v29, %v5404_v41  ;;  %v7697_v38 = vcombine.low %v5401_v22, %v5407_v53  ;;  %v7699_v0 = vcombine.high %v5398_v29, %v5404_v41 }
 0x103   : > { %v3363_v10 = vadd.f32 %v3362_v34, %v6522_v18  ;;  %v7701_v20 = vcombine.high %v5401_v22, %v5407_v53  ;;  %v3394_v2 = vadd.f32 %v3393_v28, %v6530_v59  ;;  %v3425_v29 = vadd.f32 %v3424_v44, %v6538_v11 }
 0x104   : > { %v6595_v13 = vsel %vm578_vm15, %v7696_v25, 0.0  ;;  %v6603_v19 = vsel %vm578_vm15, %v7697_v38, 0.0  ;;  %v6611_v21 = vsel %vm578_vm15, %v7699_v0, 0.0  ;;  %v3456_v41 = vadd.f32 %v3455_v37, %v6547_v55 }
 0x105   : > { %7698 = vst [vmem:[#allocation90_spill] sm:$0xff] %v6603_v19  ;;  %7700 = vst [vmem:[#allocation92_spill] sm:$0xff] %v6611_v21  ;;  %v6620_v42 = vsel %vm578_vm15, %v7701_v20, 0.0  ;;  %v3364_v35 = vadd.f32 %v3363_v10, %v6559_v36  ;;  %v3471_v62 = vmul.f32 %v5419_v39, %v5419_v39  ;;  %v3472_v53 = vmul.f32 %v5427_v7, %v5427_v7  ;;  %v7705_v10 = vld [vmem:[#allocation122_spill] sm:$0xff] }
 0x106   : > { %7702 = vst [vmem:[#allocation26_spill] sm:$0xff] %v6620_v42  ;;  %v3473_v24 = vmul.f32 %v5435_v51, %v5435_v51  ;;  %v3395_v22 = vadd.f32 %v3394_v2, %v6567_v23  ;;  %v3426_v27 = vadd.f32 %v3425_v29, %v6575_v30  ;;  %v3457_v34 = vadd.f32 %v3456_v41, %v6584_v17  ;;  %v7707_v2 = vld [vmem:[#allocation124_spill] sm:$0xff]  ;;  %v7708_v41 = vld [vmem:[#allocation125_spill] sm:$0xff] }
 0x107   : > { %v3474_v56 = vmul.f32 %v5449_v54, %v5449_v54  ;;  %v3365_v28 = vadd.f32 %v3364_v35, %v6595_v13  ;;  %v3475_v39 = vmul.f32 %v5459_v46, %v5459_v46  ;;  %v3476_v7 = vmul.f32 %v5467_v3, %v5467_v3  ;;  %v7703_v3 = vld [vmem:[#allocation120_spill] sm:$0xff] }
 0x108   : > { %v3477_v51 = vmul.f32 %v5475_v63, %v5475_v63  ;;  %v3396_v44 = vadd.f32 %v3395_v22, %v6603_v19  ;;  %v3427_v54 = vadd.f32 %v3426_v27, %v6611_v21  ;;  %v3458_v37 = vadd.f32 %v3457_v34, %v6620_v42  ;;  %v7704_v63 = vld [vmem:[#allocation121_spill] sm:$0xff]  ;;  %v7709_v27 = vld [vmem:[#allocation126_spill] sm:$0xff] }
 0x109   : > { %v3478_v25 = vmul.f32 %v5483_v61, %v5483_v61  ;;  %v3479_v46 = vmul.f32 %v5497_v6, %v5497_v6  ;;  %v3480_v38 = vmul.f32 %v7703_v3, %v7703_v3  ;;  %v3481_v0 = vmul.f32 %v7704_v63, %v7704_v63  ;;  %3463 = vst [vmem:[%s192_s4] sm:$0xff] %v3365_v28  ;;  %v7706_v61 = vld [vmem:[#allocation123_spill] sm:$0xff]  ;;  %v7712_v21 = vld [vmem:[#allocation129_spill] sm:$0xff] }
 0x10a   : > { %v3482_v20 = vmul.f32 %v7705_v10, %v7705_v10  ;;  %v3483_v6 = vmul.f32 %v7706_v61, %v7706_v61  ;;  %v3484_v29 = vmul.f32 %v7707_v2, %v7707_v2  ;;  %v3485_v35 = vmul.f32 %v7708_v41, %v7708_v41  ;;  %3464 = vst [vmem:[%s192_s4 + $0x8] sm:$0xff] %v3396_v44  ;;  %v7710_v10 = vld [vmem:[#allocation127_spill] sm:$0xff]  ;;  %v7711_v2 = vld [vmem:[#allocation128_spill] sm:$0xff] }
 0x10b   : > { %v3599_v22 = vadd.f32 %v3475_v39, %v3471_v62  ;;  %3465 = vst [vmem:[%s192_s4 + $0x10] sm:$0xff] %v3427_v54  ;;  %3466 = vst [vmem:[%s192_s4 + $0x18] sm:$0xff] %v3458_v37  ;;  %v3486_v34 = vmul.f32 %v7709_v27, %v7709_v27  ;;  %v3630_v28 = vadd.f32 %v3476_v7, %v3472_v53 }
 0x10c   : > { %v3661_v3 = vadd.f32 %v3477_v51, %v3473_v24  ;;  %v3692_v63 = vadd.f32 %v3478_v25, %v3474_v56  ;;  %v3487_v61 = vmul.f32 %v7710_v10, %v7710_v10  ;;  %v3488_v42 = vmul.f32 %v7711_v2, %v7711_v2 }
 0x10d   : > { %v3489_v41 = vmul.f32 %v7712_v21, %v7712_v21  ;;  %v3600_v62 = vadd.f32 %v3599_v22, %v3479_v46 }
 0x10e   : > { %4290 = shalt.err (!%p4287_p8)
}
 0x10f   : > { %s4291_s23 = scalar_lea.hbm %s6665_s8, 512  ;;  %s4295_s21 = scalar_lea.hbm %s6983_s1, 1024 }
 0x110   : > { %p4292_p9 = scmp.ne.s32.totalorder %s6665_s8, %s4291_s23  ;;  %p4296_p1 = scmp.lt.s32.totalorder %s6665_s8, %s6983_s1 }
 0x111   : > { %p4297_p6 = scmp.lt.s32.totalorder %s4295_s21, %s4291_s23 }
 0x112   : > { %p4293_p10 = pnand %p4292_p9, %p4497_p12 }
 0x113   : > { %p4298_p2 = por %p4297_p6, %p4296_p1 }
 0x114   : > { %p4294_p11 = pneg %p4293_p10 }
 0x116   : > { %p4299_p3 = pnand %p4298_p2, %p4294_p11 }
 0x118   : > { %4302 = shalt.err (!%p4299_p3)
}
 0x119   : > { %3907 = dma.vmem_to_hbm [thread:$0]  (%p4497_p12), %s6667_s5, 512, %s6665_s8, %s3732_s12   ;;  %v7713_v21 = vld [vmem:[#allocation11_spill] sm:$0xff]  ;;  %v3631_v24 = vadd.f32 %v3630_v28, %v3480_v38  ;;  %v3662_v56 = vadd.f32 %v3661_v3, %v3481_v0  ;;  %v3693_v39 = vadd.f32 %v3692_v63, %v3482_v20  ;;  %v7714_v7 = vld [vmem:[#allocation33_spill] sm:$0xff]  ;;  %v7715_v44 = vld [vmem:[#allocation34_spill] sm:$0xff]  ;;  %v3601_v46 = vadd.f32 %v3600_v62, %v3483_v6 }
 0x11a   : > { %v3490_v53 = vmul.f32 %v7713_v21, %v7713_v21  ;;  %v3491_v51 = vmul.f32 %v7714_v7, %v7714_v7  ;;  %v3492_v54 = vmul.f32 %v7715_v44, %v7715_v44  ;;  %v7716_v37 = vld [vmem:[#allocation35_spill] sm:$0xff]  ;;  %v7717_v22 = vld [vmem:[#allocation36_spill] sm:$0xff]  ;;  %v7719_v0 = vld [vmem:[#allocation37_spill] sm:$0xff]  ;;  %s199_s5 = scalar_lea.vmem [#allocation6], %s3890_s30  ;;  %s6929_s17 = scalar_lea.hbm %s6984_s2, %s3904_s3 }
 0x11b   : > { %v3493_v25 = vmul.f32 %v7716_v37, %v7716_v37  ;;  %v3494_v27 = vmul.f32 %v7717_v22, %v7717_v22  ;;  %v3632_v10 = vadd.f32 %v3631_v24, %v3484_v29  ;;  %v3663_v2 = vadd.f32 %v3662_v56, %v3485_v35  ;;  %v7718_v21 = vld [vmem:[#allocation12_spill] sm:$0xff]  ;;  %v7720_v28 = vld [vmem:[#allocation38_spill] sm:$0xff]  ;;  %v7721_v7 = vld [vmem:[#allocation39_spill] sm:$0xff]  ;;  %s3765_s7 = sshll.u32 %s199_s5, 4  ;;  %s3737_s30 = scalar_lea.sflag [#allocation7], %s6503_s29  ;;  %s6931_s7 = int_to_ptr.vmem [resolvable:$true] %s3765_s7 }
 0x11c   : > { %v3694_v19 = vadd.f32 %v3693_v39, %v3486_v34  ;;  %v3495_v38 = vmul.f32 %v7718_v21, %v7718_v21  ;;  %v3496_v20 = vmul.f32 %v7719_v0, %v7719_v0  ;;  %v3497_v3 = vmul.f32 %v7720_v28, %v7720_v28  ;;  %v7722_v22 = vld [vmem:[#allocation40_spill] sm:$0xff]  ;;  %v7723_v35 = vld [vmem:[#allocation13_spill] sm:$0xff]  ;;  %v7725_v21 = vld [vmem:[#allocation43_spill] sm:$0xff]  ;;  %s4303_s18 = scalar_lea.vmem %s6931_s7, 512  ;;  %s4417_s14 = smov [#allocation6]  }
 0x11d   : > { %v3602_v63 = vadd.f32 %v3601_v46, %v3487_v61  ;;  %v3498_v44 = vmul.f32 %v7721_v7, %v7721_v7  ;;  %v3633_v6 = vadd.f32 %v3632_v10, %v3488_v42  ;;  %v3664_v62 = vadd.f32 %v3663_v2, %v3489_v41  ;;  %v7724_v24 = vld [vmem:[#allocation41_spill] sm:$0xff]  ;;  %v7726_v7 = vld [vmem:[#allocation42_spill] sm:$0xff]  ;;  %p4304_p5 = scmp.ne.s32.totalorder %s6931_s7, %s4303_s18  ;;  %s4307_s20 = sshll.u32 %s4417_s14, 4  ;;  %s4308_s20 = int_to_ptr.vmem [resolvable:$false] %s4307_s20 }
 0x11e   : > { %v3695_v37 = vadd.f32 %v3694_v19, %v3490_v53  ;;  %v3499_v29 = vmul.f32 %v7722_v22, %v7722_v22  ;;  %v3500_v34 = vmul.f32 %v7723_v35, %v7723_v35  ;;  %v3501_v56 = vmul.f32 %v7724_v24, %v7724_v24  ;;  %v7727_v19 = vld [vmem:[#allocation44_spill] sm:$0xff]  ;;  %v7728_v53 = vld [vmem:[#allocation14_spill] sm:$0xff]  ;;  %v7729_v22 = vld [vmem:[#allocation45_spill] sm:$0xff]  ;;  %s4309_s3 = scalar_lea.vmem %s4308_s20, 1024  ;;  %p4310_p8 = scmp.lt.s32.totalorder %s6931_s7, %s4308_s20 }
 0x11f   : > { %v3603_v39 = vadd.f32 %v3602_v63, %v3491_v51  ;;  %v3502_v0 = vmul.f32 %v7725_v21, %v7725_v21  ;;  %v3634_v61 = vadd.f32 %v3633_v6, %v3492_v54  ;;  %v3665_v46 = vadd.f32 %v3664_v62, %v3493_v25  ;;  %v7730_v21 = vld [vmem:[#allocation46_spill] sm:$0xff]  ;;  %v7731_v25 = vld [vmem:[#allocation47_spill] sm:$0xff]  ;;  %v7732_v6 = vld [vmem:[#allocation48_spill] sm:$0xff]  ;;  %p4305_p7 = pnand %p4304_p5, %p4497_p12  ;;  %p4311_p9 = scmp.lt.s32.totalorder %s4309_s3, %s4303_s18 }
 0x120   : > { %v3696_v28 = vadd.f32 %v3695_v37, %v3494_v27  ;;  %v3503_v42 = vmul.f32 %v7726_v7, %v7726_v7  ;;  %v3504_v41 = vmul.f32 %v7727_v19, %v7727_v19  ;;  %v3505_v10 = vmul.f32 %v7728_v53, %v7728_v53  ;;  %v7733_v7 = vld [vmem:[#allocation15_spill] sm:$0xff] }
 0x121   : > { %v3604_v2 = vadd.f32 %v3603_v39, %v3495_v38  ;;  %v3506_v35 = vmul.f32 %v7729_v22, %v7729_v22  ;;  %v3635_v51 = vadd.f32 %v3634_v61, %v3496_v20  ;;  %v3666_v63 = vadd.f32 %v3665_v46, %v3497_v3  ;;  %v7734_v22 = vld [vmem:[#allocation49_spill] sm:$0xff]  ;;  %v7735_v3 = vld [vmem:[#allocation50_spill] sm:$0xff]  ;;  %v7736_v61 = vld [vmem:[#allocation51_spill] sm:$0xff]  ;;  %p4306_p4 = pneg %p4305_p7  ;;  %p4312_p10 = por %p4311_p9, %p4310_p8 }
 0x122   : > { %v3697_v24 = vadd.f32 %v3696_v28, %v3498_v44  ;;  %v3507_v54 = vmul.f32 %v7730_v21, %v7730_v21  ;;  %v3508_v27 = vmul.f32 %v7731_v25, %v7731_v25  ;;  %v3509_v62 = vmul.f32 %v7732_v6, %v7732_v6  ;;  %v7737_v21 = vld [vmem:[#allocation52_spill] sm:$0xff] }
 0x123   : > { %v3605_v37 = vadd.f32 %v3604_v2, %v3499_v29  ;;  %v3510_v19 = vmul.f32 %v7733_v7, %v7733_v7  ;;  %v3636_v38 = vadd.f32 %v3635_v51, %v3500_v34  ;;  %v3667_v39 = vadd.f32 %v3666_v63, %v3501_v56  ;;  %v7738_v7 = vld [vmem:[#allocation16_spill] sm:$0xff]  ;;  %v7739_v56 = vld [vmem:[#allocation53_spill] sm:$0xff]  ;;  %v7740_v51 = vld [vmem:[#allocation54_spill] sm:$0xff]  ;;  %p4313_p11 = pnand %p4312_p10, %p4306_p4 }
 0x124   : > { %v3698_v53 = vadd.f32 %v3697_v24, %v3502_v0  ;;  %v3511_v20 = vmul.f32 %v7734_v22, %v7734_v22  ;;  %v3512_v44 = vmul.f32 %v7735_v3, %v7735_v3  ;;  %v3513_v46 = vmul.f32 %v7736_v61, %v7736_v61  ;;  %v7741_v22 = vld [vmem:[#allocation55_spill] sm:$0xff] }
 0x125   : > { %v3606_v28 = vadd.f32 %v3605_v37, %v3503_v42  ;;  %v3514_v25 = vmul.f32 %v7737_v21, %v7737_v21  ;;  %v3637_v29 = vadd.f32 %v3636_v38, %v3504_v41  ;;  %v3668_v2 = vadd.f32 %v3667_v39, %v3505_v10  ;;  %v7742_v21 = vld [vmem:[#allocation56_spill] sm:$0xff]  ;;  %v7743_v10 = vld [vmem:[#allocation17_spill] sm:$0xff] }
 0x126   : > { %v3699_v6 = vadd.f32 %v3698_v53, %v3506_v35  ;;  %v3515_v34 = vmul.f32 %v7738_v7, %v7738_v7  ;;  %v3516_v0 = vmul.f32 %v7739_v56, %v7739_v56  ;;  %v3517_v63 = vmul.f32 %v7740_v51, %v7740_v51  ;;  %v7744_v38 = vld [vmem:[#allocation57_spill] sm:$0xff]  ;;  %v7745_v7 = vld [vmem:[#allocation59_spill] sm:$0xff] }
 0x127   : > { %v3607_v24 = vadd.f32 %v3606_v28, %v3507_v54  ;;  %v3518_v3 = vmul.f32 %v7741_v22, %v7741_v22  ;;  %v3638_v42 = vadd.f32 %v3637_v29, %v3508_v27  ;;  %v3669_v37 = vadd.f32 %v3668_v2, %v3509_v62  ;;  %v7746_v22 = vld [vmem:[#allocation58_spill] sm:$0xff]  ;;  %v7747_v62 = vld [vmem:[#allocation60_spill] sm:$0xff] }
 0x128   : > { %v3700_v61 = vadd.f32 %v3699_v6, %v3510_v19  ;;  %v3519_v41 = vmul.f32 %v7742_v21, %v7742_v21  ;;  %v3520_v35 = vmul.f32 %v7743_v10, %v7743_v10  ;;  %v3521_v39 = vmul.f32 %v7744_v38, %v7744_v38  ;;  %v7748_v29 = vld [vmem:[#allocation18_spill] sm:$0xff]  ;;  %v7749_v21 = vld [vmem:[#allocation61_spill] sm:$0xff] }
 0x129   : > { %v3608_v53 = vadd.f32 %v3607_v24, %v3511_v20  ;;  %v3522_v56 = vmul.f32 %v7745_v7, %v7745_v7  ;;  %v3639_v54 = vadd.f32 %v3638_v42, %v3512_v44  ;;  %v3670_v28 = vadd.f32 %v3669_v37, %v3513_v46  ;;  %v7750_v7 = vld [vmem:[#allocation62_spill] sm:$0xff]  ;;  %v7751_v46 = vld [vmem:[#allocation63_spill] sm:$0xff]  ;;  %v7752_v42 = vld [vmem:[#allocation64_spill] sm:$0xff] }
 0x12a   : > { %v3701_v51 = vadd.f32 %v3700_v61, %v3514_v25  ;;  %v3523_v27 = vmul.f32 %v7746_v22, %v7746_v22  ;;  %v3524_v19 = vmul.f32 %v7747_v62, %v7747_v62  ;;  %v3525_v2 = vmul.f32 %v7748_v29, %v7748_v29  ;;  %v7753_v22 = vld [vmem:[#allocation19_spill] sm:$0xff] }
 0x12b   : > { %v3609_v6 = vadd.f32 %v3608_v53, %v3515_v34  ;;  %v3526_v10 = vmul.f32 %v7749_v21, %v7749_v21  ;;  %v3640_v20 = vadd.f32 %v3639_v54, %v3516_v0  ;;  %v3671_v24 = vadd.f32 %v3670_v28, %v3517_v63  ;;  %v7754_v21 = vld [vmem:[#allocation65_spill] sm:$0xff]  ;;  %v7755_v63 = vld [vmem:[#allocation67_spill] sm:$0xff]  ;;  %v7756_v54 = vld [vmem:[#allocation66_spill] sm:$0xff] }
 0x12c   : > { %v3702_v38 = vadd.f32 %v3701_v51, %v3518_v3  ;;  %v3527_v44 = vmul.f32 %v7750_v7, %v7750_v7  ;;  %v3528_v25 = vmul.f32 %v7751_v46, %v7751_v46  ;;  %v3529_v37 = vmul.f32 %v7752_v42, %v7752_v42  ;;  %v7757_v7 = vld [vmem:[#allocation68_spill] sm:$0xff] }
 0x12d   : > { %v3610_v61 = vadd.f32 %v3609_v6, %v3519_v41  ;;  %v3530_v62 = vmul.f32 %v7753_v22, %v7753_v22  ;;  %v3641_v34 = vadd.f32 %v3640_v20, %v3520_v35  ;;  %v3672_v53 = vadd.f32 %v3671_v24, %v3521_v39  ;;  %v7758_v22 = vld [vmem:[#allocation20_spill] sm:$0xff]  ;;  %v7759_v39 = vld [vmem:[#allocation69_spill] sm:$0xff]  ;;  %v7760_v20 = vld [vmem:[#allocation70_spill] sm:$0xff] }
 0x12e   : > { %v3703_v29 = vadd.f32 %v3702_v38, %v3522_v56  ;;  %v3531_v0 = vmul.f32 %v7754_v21, %v7754_v21  ;;  %v3532_v3 = vmul.f32 %v7755_v63, %v7755_v63  ;;  %v3533_v28 = vmul.f32 %v7756_v54, %v7756_v54  ;;  %v7761_v21 = vld [vmem:[#allocation71_spill] sm:$0xff] }
 0x12f   : > { %v3611_v51 = vadd.f32 %v3610_v61, %v3523_v27  ;;  %v3534_v46 = vmul.f32 %v7757_v7, %v7757_v7  ;;  %v3642_v41 = vadd.f32 %v3641_v34, %v3524_v19  ;;  %v3673_v6 = vadd.f32 %v3672_v53, %v3525_v2  ;;  %v7762_v7 = vld [vmem:[#allocation72_spill] sm:$0xff]  ;;  %v7763_v2 = vld [vmem:[#allocation21_spill] sm:$0xff] }
 0x130   : > { %v3704_v42 = vadd.f32 %v3703_v29, %v3526_v10  ;;  %v3535_v35 = vmul.f32 %v7758_v22, %v7758_v22  ;;  %v3536_v56 = vmul.f32 %v7759_v39, %v7759_v39  ;;  %v3537_v24 = vmul.f32 %v7760_v20, %v7760_v20  ;;  %v7764_v34 = vld [vmem:[#allocation73_spill] sm:$0xff]  ;;  %v7765_v22 = vld [vmem:[#allocation75_spill] sm:$0xff] }
 0x131   : > { %v3612_v38 = vadd.f32 %v3611_v51, %v3527_v44  ;;  %v3538_v63 = vmul.f32 %v7761_v21, %v7761_v21  ;;  %v3643_v27 = vadd.f32 %v3642_v41, %v3528_v25  ;;  %v3674_v61 = vadd.f32 %v3673_v6, %v3529_v37  ;;  %v7766_v21 = vld [vmem:[#allocation74_spill] sm:$0xff]  ;;  %v7767_v37 = vld [vmem:[#allocation76_spill] sm:$0xff] }
 0x132   : > { %v3705_v54 = vadd.f32 %v3704_v42, %v3530_v62  ;;  %v3539_v19 = vmul.f32 %v7762_v7, %v7762_v7  ;;  %v3540_v10 = vmul.f32 %v7763_v2, %v7763_v2  ;;  %v3541_v53 = vmul.f32 %v7764_v34, %v7764_v34  ;;  %v7768_v41 = vld [vmem:[#allocation22_spill] sm:$0xff]  ;;  %v7769_v7 = vld [vmem:[#allocation77_spill] sm:$0xff] }
 0x133   : > { %v3613_v29 = vadd.f32 %v3612_v38, %v3531_v0  ;;  %v3542_v39 = vmul.f32 %v7765_v22, %v7765_v22  ;;  %v3644_v44 = vadd.f32 %v3643_v27, %v3532_v3  ;;  %v3675_v51 = vadd.f32 %v3674_v61, %v3533_v28  ;;  %v7770_v22 = vld [vmem:[#allocation79_spill] sm:$0xff]  ;;  %v7771_v28 = vld [vmem:[#allocation78_spill] sm:$0xff]  ;;  %v7772_v27 = vld [vmem:[#allocation80_spill] sm:$0xff] }
 0x134   : > { %v3706_v20 = vadd.f32 %v3705_v54, %v3534_v46  ;;  %v3543_v25 = vmul.f32 %v7766_v21, %v7766_v21  ;;  %v3544_v62 = vmul.f32 %v7767_v37, %v7767_v37  ;;  %v3545_v6 = vmul.f32 %v7768_v41, %v7768_v41  ;;  %v7773_v21 = vld [vmem:[#allocation23_spill] sm:$0xff] }
 0x135   : > { %v3614_v42 = vadd.f32 %v3613_v29, %v3535_v35  ;;  %v3546_v2 = vmul.f32 %v7769_v7, %v7769_v7  ;;  %v3645_v0 = vadd.f32 %v3644_v44, %v3536_v56  ;;  %v3676_v38 = vadd.f32 %v3675_v51, %v3537_v24  ;;  %v7774_v7 = vld [vmem:[#allocation81_spill] sm:$0xff]  ;;  %v7775_v24 = vld [vmem:[#allocation82_spill] sm:$0xff]  ;;  %v7776_v44 = vld [vmem:[#allocation83_spill] sm:$0xff] }
 0x136   : > { %v3707_v34 = vadd.f32 %v3706_v20, %v3538_v63  ;;  %v3547_v3 = vmul.f32 %v7770_v22, %v7770_v22  ;;  %v3548_v46 = vmul.f32 %v7771_v28, %v7771_v28  ;;  %v3549_v61 = vmul.f32 %v7772_v27, %v7772_v27  ;;  %v7777_v22 = vld [vmem:[#allocation84_spill] sm:$0xff] }
 0x137   : > { %v3615_v54 = vadd.f32 %v3614_v42, %v3539_v19  ;;  %v3550_v37 = vmul.f32 %v7773_v21, %v7773_v21  ;;  %v3646_v35 = vadd.f32 %v3645_v0, %v3540_v10  ;;  %v3677_v29 = vadd.f32 %v3676_v38, %v3541_v53  ;;  %v7778_v21 = vld [vmem:[#allocation24_spill] sm:$0xff]  ;;  %v7779_v53 = vld [vmem:[#allocation85_spill] sm:$0xff]  ;;  %v7780_v0 = vld [vmem:[#allocation86_spill] sm:$0xff] }
 0x138   : > { %v3708_v41 = vadd.f32 %v3707_v34, %v3542_v39  ;;  %v3551_v56 = vmul.f32 %v7774_v7, %v7774_v7  ;;  %v3552_v63 = vmul.f32 %v7775_v24, %v7775_v24  ;;  %v3553_v51 = vmul.f32 %v7776_v44, %v7776_v44  ;;  %v7781_v7 = vld [vmem:[#allocation87_spill] sm:$0xff] }
 0x139   : > { %v3616_v20 = vadd.f32 %v3615_v54, %v3543_v25  ;;  %v3554_v28 = vmul.f32 %v7777_v22, %v7777_v22  ;;  %v3647_v19 = vadd.f32 %v3646_v35, %v3544_v62  ;;  %v3678_v42 = vadd.f32 %v3677_v29, %v3545_v6  ;;  %v7782_v22 = vld [vmem:[#allocation88_spill] sm:$0xff]  ;;  %v7783_v29 = vld [vmem:[#allocation25_spill] sm:$0xff] }
 0x13a   : > { %v3709_v27 = vadd.f32 %v3708_v41, %v3546_v2  ;;  %v3555_v10 = vmul.f32 %v7778_v21, %v7778_v21  ;;  %v3556_v39 = vmul.f32 %v7779_v53, %v7779_v53  ;;  %v3557_v38 = vmul.f32 %v7780_v0, %v7780_v0  ;;  %v7784_v53 = vld [vmem:[#allocation89_spill] sm:$0xff] }
 0x13b   : > { %v3617_v34 = vadd.f32 %v3616_v20, %v3547_v3  ;;  %v3558_v24 = vmul.f32 %v7781_v7, %v7781_v7  ;;  %v3648_v25 = vadd.f32 %v3647_v19, %v3548_v46  ;;  %v3679_v54 = vadd.f32 %v3678_v42, %v3549_v61  ;;  %v7785_v19 = vld [vmem:[#allocation91_spill] sm:$0xff] }
 0x13c   : > { %v3710_v44 = vadd.f32 %v3709_v27, %v3550_v37  ;;  %v3559_v62 = vmul.f32 %v7782_v22, %v7782_v22  ;;  %v3560_v6 = vmul.f32 %v6267_v5, %v6267_v5  ;;  %v3561_v2 = vmul.f32 %v6275_v50, %v6275_v50 }
 0x13d   : > { %v3618_v35 = vadd.f32 %v3617_v34, %v3551_v56  ;;  %v3562_v41 = vmul.f32 %v7783_v29, %v7783_v29  ;;  %v3649_v3 = vadd.f32 %v3648_v25, %v3552_v63  ;;  %v3680_v20 = vadd.f32 %v3679_v54, %v3553_v51 }
 0x13e   : > { %v3711_v21 = vadd.f32 %v3710_v44, %v3554_v28  ;;  %v3563_v46 = vmul.f32 %v7784_v53, %v7784_v53  ;;  %v3564_v61 = vmul.f32 %v6305_v26, %v6305_v26  ;;  %v3565_v37 = vmul.f32 %v6313_v31, %v6313_v31 }
 0x13f   : > { %v3619_v5 = vadd.f32 %v3618_v35, %v3555_v10  ;;  %v3566_v50 = vmul.f32 %v7785_v19, %v7785_v19  ;;  %v3650_v56 = vadd.f32 %v3649_v3, %v3556_v39  ;;  %v3681_v42 = vadd.f32 %v3680_v20, %v3557_v38 }
 0x140   : > { %v3712_v27 = vadd.f32 %v3711_v21, %v3558_v24  ;;  %v3567_v63 = vmul.f32 %v6335_v45, %v6335_v45  ;;  %v3568_v51 = vmul.f32 %v6343_v4, %v6343_v4  ;;  %v3569_v28 = vmul.f32 %v6351_v47, %v6351_v47 }
 0x141   : > { %v3620_v26 = vadd.f32 %v3619_v5, %v3559_v62  ;;  %v3570_v31 = vmul.f32 %v6362_v8, %v6362_v8  ;;  %v3651_v10 = vadd.f32 %v3650_v56, %v3560_v6  ;;  %v3682_v0 = vadd.f32 %v3681_v42, %v3561_v2  ;;  %v7786_v42 = vld [vmem:[#allocation90_spill] sm:$0xff] }
 0x142   : > { %v3713_v34 = vadd.f32 %v3712_v27, %v3562_v41  ;;  %v3571_v39 = vmul.f32 %v6373_v40, %v6373_v40  ;;  %v3572_v38 = vmul.f32 %v6381_v33, %v6381_v33  ;;  %v3573_v45 = vmul.f32 %v6389_v49, %v6389_v49  ;;  %v7787_v27 = vld [vmem:[#allocation92_spill] sm:$0xff] }
 0x143   : > { %v3621_v4 = vadd.f32 %v3620_v26, %v3563_v46  ;;  %v3574_v47 = vmul.f32 %v6400_v1, %v6400_v1  ;;  %v3652_v7 = vadd.f32 %v3651_v10, %v3564_v61  ;;  %v3683_v24 = vadd.f32 %v3682_v0, %v3565_v37 }
 0x144   : > { %v3714_v25 = vadd.f32 %v3713_v34, %v3566_v50  ;;  %v3575_v8 = vmul.f32 %v6411_v32, %v6411_v32  ;;  %v3576_v54 = vmul.f32 %v6419_v12, %v6419_v12  ;;  %v3577_v40 = vmul.f32 %v6427_v57, %v6427_v57 }
 0x145   : > { %v3622_v33 = vadd.f32 %v3621_v4, %v3567_v63  ;;  %v3578_v49 = vmul.f32 %v6436_v14, %v6436_v14  ;;  %v3653_v44 = vadd.f32 %v3652_v7, %v3568_v51  ;;  %v3684_v22 = vadd.f32 %v3683_v24, %v3569_v28 }
 0x146   : > { %v3715_v62 = vadd.f32 %v3714_v25, %v3570_v31  ;;  %v3579_v1 = vmul.f32 %v6447_v15, %v6447_v15  ;;  %v3580_v6 = vmul.f32 %v6455_v58, %v6455_v58  ;;  %v3581_v32 = vmul.f32 %v6463_v43, %v6463_v43 }
 0x147   : > { %v3623_v12 = vadd.f32 %v3622_v33, %v3571_v39  ;;  %v3582_v57 = vmul.f32 %v6472_v48, %v6472_v48  ;;  %v3654_v2 = vadd.f32 %v3653_v44, %v3572_v38  ;;  %v3685_v35 = vadd.f32 %v3684_v22, %v3573_v45 }
 0x148   : > { %v3716_v29 = vadd.f32 %v3715_v62, %v3574_v47  ;;  %v3583_v14 = vmul.f32 %v6483_v16, %v6483_v16  ;;  %v3584_v41 = vmul.f32 %v6491_v52, %v6491_v52  ;;  %v3585_v15 = vmul.f32 %v6499_v60, %v6499_v60 }
 0x149   : > { %v3624_v58 = vadd.f32 %v3623_v12, %v3575_v8  ;;  %v3586_v43 = vmul.f32 %v6511_v9, %v6511_v9  ;;  %v3655_v3 = vadd.f32 %v3654_v2, %v3576_v54  ;;  %v3686_v20 = vadd.f32 %v3685_v35, %v3577_v40 }
 0x14a   : > { %v3717_v21 = vadd.f32 %v3716_v29, %v3578_v49  ;;  %v3587_v48 = vmul.f32 %v6522_v18, %v6522_v18  ;;  %v3588_v53 = vmul.f32 %v6530_v59, %v6530_v59  ;;  %v3589_v16 = vmul.f32 %v6538_v11, %v6538_v11 }
 0x14b   : > { %v3625_v52 = vadd.f32 %v3624_v58, %v3579_v1  ;;  %v3590_v60 = vmul.f32 %v6547_v55, %v6547_v55  ;;  %v3656_v46 = vadd.f32 %v3655_v3, %v3580_v6  ;;  %v3687_v61 = vadd.f32 %v3686_v20, %v3581_v32 }
 0x14c   : > { %v3718_v37 = vadd.f32 %v3717_v21, %v3582_v57  ;;  %v3591_v9 = vmul.f32 %v6559_v36, %v6559_v36  ;;  %v3592_v5 = vmul.f32 %v6567_v23, %v6567_v23  ;;  %v3593_v18 = vmul.f32 %v6575_v30, %v6575_v30  ;;  %v7788_v30 = vld [vmem:[#allocation26_spill] sm:$0xff] }
 0x14d   : > { %v3626_v59 = vadd.f32 %v3625_v52, %v3583_v14  ;;  %v3594_v11 = vmul.f32 %v6584_v17, %v6584_v17  ;;  %v3657_v19 = vadd.f32 %v3656_v46, %v3584_v41  ;;  %v3688_v50 = vadd.f32 %v3687_v61, %v3585_v15 }
 0x14e   : > { %v3719_v55 = vadd.f32 %v3718_v37, %v3586_v43  ;;  %v3595_v56 = vmul.f32 %v6595_v13, %v6595_v13  ;;  %v3596_v36 = vmul.f32 %v7786_v42, %v7786_v42  ;;  %v3597_v23 = vmul.f32 %v7787_v27, %v7787_v27 }
 0x14f   : > { %v3627_v63 = vadd.f32 %v3626_v59, %v3587_v48  ;;  %v3598_v51 = vmul.f32 %v7788_v30, %v7788_v30  ;;  %v3658_v28 = vadd.f32 %v3657_v19, %v3588_v53  ;;  %v3689_v17 = vadd.f32 %v3688_v50, %v3589_v16 }
 0x150   : > { %v3720_v26 = vadd.f32 %v3719_v55, %v3590_v60 }
 0x151   : > { %v3628_v31 = vadd.f32 %v3627_v63, %v3591_v9  ;;  %v3659_v10 = vadd.f32 %v3658_v28, %v3592_v5  ;;  %v3690_v0 = vadd.f32 %v3689_v17, %v3593_v18 }
 0x152   : > { %v3721_v34 = vadd.f32 %v3720_v26, %v3594_v11 }
 0x153   : > { %v3629_v13 = vadd.f32 %v3628_v31, %v3595_v56  ;;  %v3660_v39 = vadd.f32 %v3659_v10, %v3596_v36  ;;  %v3691_v38 = vadd.f32 %v3690_v0, %v3597_v23 }
 0x154   : > { %v3722_v45 = vadd.f32 %v3721_v34, %v3598_v51 }
 0x155   : > { %3727 = vst [vmem:[%s199_s5] sm:$0xff] %v3629_v13  ;;  %3728 = vst [vmem:[%s199_s5 + $0x8] sm:$0xff] %v3660_v39 }
 0x156   : > { %3729 = vst [vmem:[%s199_s5 + $0x10] sm:$0xff] %v3691_v38  ;;  %3730 = vst [vmem:[%s199_s5 + $0x18] sm:$0xff] %v3722_v45 }
 0x157   : > { %4316 = shalt.err (!%p4313_p11)
}
 0x158   : > { %s4317_s22 = scalar_lea.hbm %s6929_s17, 512  ;;  %s4321_s27 = scalar_lea.hbm %s6984_s2, 1024 }
 0x159   : > { %p4318_p1 = scmp.ne.s32.totalorder %s6929_s17, %s4317_s22  ;;  %p4322_p3 = scmp.lt.s32.totalorder %s6929_s17, %s6984_s2 }
 0x15a   : > { %p4323_p5 = scmp.lt.s32.totalorder %s4321_s27, %s4317_s22 }
 0x15b   : > { %p4319_p6 = pnand %p4318_p1, %p4497_p12 }
 0x15c   : > { %p4324_p7 = por %p4323_p5, %p4322_p3 }
 0x15d   : > { %p4320_p2 = pneg %p4319_p6 }
 0x15f   : > { %p4325_p4 = pnand %p4324_p7, %p4320_p2 }
 0x161   : > { %4328 = shalt.err (!%p4325_p4)
}
 0x162   : > { %3908 = dma.vmem_to_hbm [thread:$0]  (%p4497_p12), %s6931_s7, 512, %s6929_s17, %s3737_s30  }
 0x163 PF: > { %s3777_s4 = sand.u32 1, %s4382_s9   ;;  %p3912_p8 = pnand %p3878_p0, %p4501_p13 }
 0x164   : > { %s3778_s6 = scalar_lea.sflag [#allocation4], %s3777_s4 }
 0x165   : > { %p3913_p9 = pneg %p3912_p8 }
 0x167   : > { %4370 = dma.done.wait (%p3913_p9), %s3778_s6, 512  }
 0x168   : > { %4372 = vsyncadd (%p3913_p9), %s3778_s6, 4294966784  ;;  %s3787_s5 = scalar_lea.sflag [#allocation7], %s3777_s4 }
 0x169   : > { %4374 = dma.done.wait (%p3913_p9), %s3787_s5, 512  }
 0x16a   : > { %4376 = vsyncadd (%p3913_p9), %s3787_s5, 4294966784  ;;  %s22_s16 = sadd.s32 1, %s4410_s16   ;;  %s7789_s9 = smov %s4386_s10 }
 0x16b   : > { %p19_p10 = scmp.ge.s32.totalorder %s22_s16, 4   ;;  %s7790_s10 = smov %s4390_s11 }
 0x16c   : > { %s7791_s11 = smov %s4491_s24  ;;  %s7792_s12 = smov %s4398_s13 }
 0x16d   : > { %s6972_s13 = smov 0   ;;  %s7793_s14 = smov %s4406_s15 }
 0x16e   : > { %s7794_s15 = smov %s7796_s19  ;;  %21 = sbr.rel (!%p19_p10) target bundleno = 9 (0x9), region = 91 }
 0x173   :  { %3792 = vsyncpa [#allocation3], 1 }
 0x174   :  { %3794 = vsyncpa [#allocation3 + $0x1], 1 }
 0x175   :  { %3795 = vsyncpa [#allocation4], 1 }
 0x176   :  { %3797 = vsyncpa [#allocation4 + $0x1], 1 }
 0x177   :  { %3798 = vsyncpa [#allocation7], 1 }
 0x178   :  { %3800 = vsyncpa [#allocation7 + $0x1], 1 }

</bundles_post_ra>
